<compile_context>
chip_gen: v5e
topology: v5e:2x2
jax: 0.10.0
libtpu: 0.0.40
codegen_flags: <defaults>
</compile_context>

<pallas_src>
import math

import jax
import jax.numpy as jnp
from jax.experimental import pallas as pl
from jax.experimental.pallas import tpu as pltpu


_LN_EPS = 1e-5  # torch.nn.LayerNorm default


def _layernorm(v, gamma, beta):
    mu = jnp.mean(v, axis=-1, keepdims=True)
    var = jnp.mean(jnp.square(v - mu), axis=-1, keepdims=True)
    return (v - mu) * jax.lax.rsqrt(var + _LN_EPS) * gamma + beta


def _positional_encoding(seq_len, d_model):
    position = jnp.arange(seq_len, dtype=jnp.float32)[:, None]
    div_term = jnp.exp(jnp.arange(0, d_model, 2, dtype=jnp.float32)
                       * (-math.log(10000.0) / d_model))
    ang = position * div_term                                   # (T, D//2)
    pe = jnp.zeros((seq_len, d_model), jnp.float32)
    pe = pe.at[:, 0::2].set(jnp.sin(ang))
    pe = pe.at[:, 1::2].set(jnp.cos(ang))
    return pe


def _make_classifier_kernel(n_layers, n_heads, head_dim, block_b, seq_len,
                            d_model, ffn_dim, compute_dtype):
    scale = 1.0 / math.sqrt(head_dim)
    Bb, T, D, F, H = block_b, seq_len, d_model, ffn_dim, n_heads

    def mm(a, w):
        # bf16 (or f32) MXU operands, f32 accumulation.
        return jnp.dot(a.astype(compute_dtype), w.astype(compute_dtype),
                       preferred_element_type=jnp.float32)

    def kernel(x_ref, pe_ref, bias_ref,
               wqkv_ref, wo_ref, w1_ref, w2_ref, small_ref,
               wc_ref, bc_ref, out_ref):
        # (Bb, T, D) activations; positional encoding broadcast over the block.
        h = (x_ref[...] + pe_ref[...]).reshape(Bb * T, D)       # stacked rows
        key_bias = bias_ref[...]                                # (Bb, 1, T)

        # TODO(synk): for large n_layers / realistic probe sizes swap this
        # unrolled loop for a layer-as-grid-axis ("arbitrary") scheme that
        # streams one layer's weights at a time (v7x has only 64 MiB VMEM) and
        # bounds vreg live ranges.
        for l in range(n_layers):
            sp = small_ref[l]                                   # (8, Cmax) packed
            bqkv = sp[0:1, 0:3 * D]
            bo   = sp[1:2, 0:D]
            g1   = sp[2:3, 0:D]
            be1  = sp[3:4, 0:D]
            bb1  = sp[4:5, 0:F]
            bb2  = sp[5:6, 0:D]
            g2   = sp[6:7, 0:D]
            be2  = sp[7:8, 0:D]

            # ---- multi-head self-attention (eval mode: dropout = identity) ----
            qkv = mm(h, wqkv_ref[l]) + bqkv                     # (Bb*T, 3D)
            qkv3 = qkv.reshape(Bb, T, 3 * D)

            head_outs = []
            for hh in range(H):
                lo = hh * head_dim
                q = qkv3[:, :, lo:lo + head_dim]                # (Bb, T, hd)
                k = qkv3[:, :, D + lo:D + lo + head_dim]
                v = qkv3[:, :, 2 * D + lo:2 * D + lo + head_dim]
                s = jnp.einsum('bqd,bkd->bqk',
                               q.astype(compute_dtype), k.astype(compute_dtype),
                               preferred_element_type=jnp.float32)
                s = s * scale + key_bias                        # (Bb, T, T)
                s = s - jnp.max(s, axis=-1, keepdims=True)
                p = jnp.exp(s)
                p = p * pl.reciprocal(jnp.sum(p, axis=-1, keepdims=True),
                                      approx=True)
                o = jnp.einsum('bqk,bkd->bqd',
                               p.astype(compute_dtype), v.astype(compute_dtype),
                               preferred_element_type=jnp.float32)
                head_outs.append(o)
            # concat(heads) -> ONE (Bb*T, D) x (D, D) output projection.
            o_all = jnp.concatenate(head_outs, axis=-1).reshape(Bb * T, D)
            attn = mm(o_all, wo_ref[l]) + bo
            h = _layernorm(h + attn, g1, be1)                   # post-LN

            # ---- feed-forward (ReLU) ----
            if l == n_layers - 1:
                # Only time-step 0 feeds the classifier head; FFN/LN are
                # per-row, so drop the other T-1 rows before the biggest GEMMs.
                h = h.reshape(Bb, T, D)[:, 0, :]                # (Bb, D)
            f = jnp.maximum(mm(h, w1_ref[l]) + bb1, 0.0)
            f = mm(f, w2_ref[l]) + bb2
            h = _layernorm(h + f, g2, be2)

        # ---- classifier head + log_softmax (f32) ----
        logits = mm(h, wc_ref[...]) + bc_ref[...]               # (Bb, S)
        shifted = logits - jnp.max(logits, axis=-1, keepdims=True)
        lse = jnp.log(jnp.sum(jnp.exp(shifted), axis=-1, keepdims=True))
        out_ref[0] = shifted - lse

    return kernel


def classifier_forward(x, padding_mask, params, *, n_heads, block_b=None,
                       max_len=5000, use_bf16=True):
    """Pallas equivalent of Classifier.forward (eval mode).

    x:            (T, B, D) float32, seq-first (PyTorch batch_first=False)
    padding_mask: (B, T) bool, True = padded key position
    returns:      (B, total_speakers) float32 log-probabilities
    """
    T, B, D = x.shape
    assert T < max_len, f"seq_len {T} must be < max_len {max_len}"
    L = params["wqkv"].shape[0]
    S = params["wc"].shape[0]
    F_hid = params["w1"].shape[1]
    assert D % n_heads == 0
    head_dim = D // n_heads

    # Batch-block size: big enough to stack rows for the shared-weight GEMMs,
    # but keep >=2 grid steps when possible so both v7x TensorCores get work.
    if block_b is None:
        block_b = min(8, pl.cdiv(B, 2)) if B > 1 else 1
    n_blocks = pl.cdiv(B, block_b)
    B_pad = n_blocks * block_b

    w_dtype = jnp.bfloat16 if use_bf16 else jnp.float32

    # Pre-transpose weights once (host side) to (K, N) so the kernel does plain
    # `a @ w`, and store matmul weights in the MXU-native dtype.
    wqkv_t = jnp.transpose(params["wqkv"], (0, 2, 1)).astype(w_dtype)  # (L, D, 3D)
    wo_t   = jnp.transpose(params["wo"],   (0, 2, 1)).astype(w_dtype)  # (L, D, D)
    w1_t   = jnp.transpose(params["w1"],   (0, 2, 1)).astype(w_dtype)  # (L, D, F)
    w2_t   = jnp.transpose(params["w2"],   (0, 2, 1)).astype(w_dtype)  # (L, F, D)
    wc_t   = jnp.transpose(params["wc"],   (1, 0)).astype(w_dtype)     # (D, S)
    bc     = params["bc"].astype(jnp.float32)                          # (1, S)

    # Pack all per-layer vectors (biases + LayerNorm scales/shifts) into one
    # (L, 8, Cmax) resident array -> one pipelined input instead of eight.
    Cmax = max(3 * D, F_hid, D)

    def _row(v, width):
        v2 = v.reshape(L, -1).astype(jnp.float32)
        return jnp.pad(v2, ((0, 0), (0, Cmax - width)))

    small = jnp.stack([
        _row(params["bqkv"], 3 * D),
        _row(params["bo"],   D),
        _row(params["g1"],   D),
        _row(params["be1"],  D),
        _row(params["bb1"],  F_hid),
        _row(params["bb2"],  D),
        _row(params["g2"],   D),
        _row(params["be2"],  D),
    ], axis=1)                                                          # (L, 8, Cmax)

    pe = _positional_encoding(T, D)                                     # (T, D)
    xb = jnp.transpose(x, (1, 0, 2)).astype(jnp.float32)                # (B, T, D)
    key_bias = jnp.where(padding_mask, -1e9, 0.0).astype(jnp.float32)[:, None, :]
    if B_pad != B:
        xb = jnp.pad(xb, ((0, B_pad - B), (0, 0), (0, 0)))
        key_bias = jnp.pad(key_bias, ((0, B_pad - B), (0, 0), (0, 0)))

    weight_args = (wqkv_t, wo_t, w1_t, w2_t, small, wc_t, bc)
    inputs = (xb, pe, key_bias) + weight_args

    def _resident(arr):
        n = arr.ndim
        return pl.BlockSpec(arr.shape, lambda i, _n=n: (0,) * _n)

    in_specs = ([pl.BlockSpec((block_b, T, D), lambda i: (i, 0, 0)),
                 _resident(pe),
                 pl.BlockSpec((block_b, 1, T), lambda i: (i, 0, 0))]
                + [_resident(w) for w in weight_args])

    # Advisory cost hint (includes the attention out-projection term).
    flops_layer = 8 * T * D * D + 4 * T * T * D + 4 * T * D * F_hid
    flops = B_pad * (L * flops_layer + 2 * D * S)
    transcendentals = B_pad * (L * n_heads * T * T + S)
    bytes_accessed = (sum(int(a.size) * a.dtype.itemsize for a in inputs)
                      + B_pad * S * 4)

    kernel = _make_classifier_kernel(
        L, n_heads, head_dim, block_b, T, D, F_hid,
        jnp.bfloat16 if use_bf16 else jnp.float32)

    out = pl.pallas_call(
        kernel,
        out_shape=jax.ShapeDtypeStruct((n_blocks, block_b, S), jnp.float32),
        grid_spec=pltpu.PrefetchScalarGridSpec(
            num_scalar_prefetch=0,
            grid=(n_blocks,),
            in_specs=in_specs,
            out_specs=pl.BlockSpec((1, block_b, S), lambda i: (i, 0, 0)),
        ),
        compiler_params=pltpu.CompilerParams(
            dimension_semantics=("parallel",),
        ),
        cost_estimate=pl.CostEstimate(
            flops=flops,
            transcendentals=transcendentals,
            bytes_accessed=bytes_accessed),
    )(*inputs)
    return out.reshape(B_pad, S)[:B]


# ----------------------------- parameters & reference -----------------------


def init_params(key, D, n_heads, F_hid, L, S):
    ks = jax.random.split(key, 14)

    def nrm(k, shape, s=0.05):
        return (s * jax.random.normal(k, shape)).astype(jnp.float32)

    return {
        "wqkv": nrm(ks[0], (L, 3 * D, D)),
        "bqkv": nrm(ks[1], (L, 1, 3 * D)),
        "wo":   nrm(ks[2], (L, D, D)),
        "bo":   nrm(ks[3], (L, 1, D)),
        "g1":   1.0 + nrm(ks[4], (L, 1, D), 0.01),
        "be1":  nrm(ks[5], (L, 1, D), 0.01),
        "w1":   nrm(ks[6], (L, F_hid, D)),
        "bb1":  nrm(ks[7], (L, 1, F_hid)),
        "w2":   nrm(ks[8], (L, D, F_hid)),
        "bb2":  nrm(ks[9], (L, 1, D)),
        "g2":   1.0 + nrm(ks[10], (L, 1, D), 0.01),
        "be2":  nrm(ks[11], (L, 1, D), 0.01),
        "wc":   nrm(ks[12], (S, D)),
        "bc":   nrm(ks[13], (1, S)),
    }


def reference_forward(x, padding_mask, params, *, n_heads):
    """Pure-JAX f32 reference mirroring PyTorch TransformerEncoder (eval mode)."""
    T, B, D = x.shape
    H = n_heads
    hd = D // H
    pe = _positional_encoding(T, D)
    h = x + pe[:, None, :]
    bias = jnp.where(padding_mask, -1e9, 0.0).astype(jnp.float32)   # (B, T)
    L = params["wqkv"].shape[0]
    for l in range(L):
        qkv = jnp.einsum("tbd,ed->tbe", h, params["wqkv"][l]) + params["bqkv"][l][0]
        q, k, v = jnp.split(qkv, 3, axis=-1)
        q = q.reshape(T, B, H, hd) / math.sqrt(hd)
        k = k.reshape(T, B, H, hd)
        v = v.reshape(T, B, H, hd)
        s = jnp.einsum("tbhd,sbhd->bhts", q, k) + bias[:, None, None, :]
        p = jax.nn.softmax(s, axis=-1)
        a = jnp.einsum("bhts,sbhd->tbhd", p, v).reshape(T, B, D)
        a = jnp.einsum("tbd,ed->tbe", a, params["wo"][l]) + params["bo"][l][0]
        h = _layernorm(h + a, params["g1"][l][0], params["be1"][l][0])
        f = jnp.maximum(
            jnp.einsum("tbd,fd->tbf", h, params["w1"][l]) + params["bb1"][l][0], 0.0)
        f = jnp.einsum("tbf,df->tbd", f, params["w2"][l]) + params["bb2"][l][0]
        h = _layernorm(h + f, params["g2"][l][0], params["be2"][l][0])
    logits = h[0] @ params["wc"].T + params["bc"][0]
    return jax.nn.log_softmax(logits, axis=-1)


# TODO(synk): dropout (PositionalEncoding p=0.0, encoder/attention dropout) is
# omitted — forward pass implemented in inference/eval mode (identity dropout).

if __name__ == "__main__":
    key = jax.random.PRNGKey(0)
    k_x, k_p = jax.random.split(key)

    # Small shapes consistent with the module.
    T, B = 8, 4                            # seq_len (seq-first), batch
    D, H, F_hid, L, S = 32, 4, 64, 2, 16   # embed, heads, ffn hidden, layers, speakers

    x = jax.random.normal(k_x, (T, B, D), dtype=jnp.float32)
    padding_mask = (jnp.zeros((B, T), dtype=bool)
                    .at[1, 6:].set(True)
                    .at[3, 5:].set(True))
    params = init_params(k_p, D, H, F_hid, L, S)

    out = classifier_forward(x, padding_mask, params, n_heads=H)
    out = jax.block_until_ready(out)

    ref = reference_forward(x, padding_mask, params, n_heads=H)
    assert out.shape == (B, S) and out.dtype == jnp.float32
    err = float(jnp.max(jnp.abs(out - ref)))
    # bf16 MXU operands + EUP approx reciprocal vs. a pure-f32 reference.
    assert err < 3e-2, f"max abs err {err}"
    # rows of a log_softmax must normalize (computed exactly in f32)
    assert jnp.allclose(jnp.sum(jnp.exp(out), axis=-1), 1.0, atol=1e-3)

    print("KERNEL_OK")
</pallas_src>

<mosaic_0001>
module attributes {stable_mosaic.version = 11 : i64} {
  func.func @kernel(%arg0: i32, %arg1: memref<2x8x32xf32, #tpu.memory_space<vmem>>, %arg2: memref<8x32xf32, #tpu.memory_space<vmem>>, %arg3: memref<2x1x8xf32, #tpu.memory_space<vmem>>, %arg4: memref<2x32x96xbf16, #tpu.memory_space<vmem>>, %arg5: memref<2x32x32xbf16, #tpu.memory_space<vmem>>, %arg6: memref<2x32x64xbf16, #tpu.memory_space<vmem>>, %arg7: memref<2x64x32xbf16, #tpu.memory_space<vmem>>, %arg8: memref<2x8x96xf32, #tpu.memory_space<vmem>>, %arg9: memref<32x16xbf16, #tpu.memory_space<vmem>>, %arg10: memref<1x16xf32, #tpu.memory_space<vmem>>, %arg11: memref<1x2x16xf32, #tpu.memory_space<vmem>>) attributes {dimension_semantics = [#tpu.dimension_semantics<parallel>], iteration_bounds = array<i64: 2>, scalar_prefetch = 0 : i64, scratch_operands = 0 : i64, tpu.core_type = #tpu.core_type<tc>, window_params = [{transform_indices = @transform_0, window_bounds = array<i64: 2, 8, 32>}, {pipeline_mode = #tpu.pipeline_mode<synchronous>, transform_indices = @transform_1, window_bounds = array<i64: 8, 32>}, {transform_indices = @transform_2, window_bounds = array<i64: 2, 1, 8>}, {pipeline_mode = #tpu.pipeline_mode<synchronous>, transform_indices = @transform_3, window_bounds = array<i64: 2, 32, 96>}, {pipeline_mode = #tpu.pipeline_mode<synchronous>, transform_indices = @transform_4, window_bounds = array<i64: 2, 32, 32>}, {pipeline_mode = #tpu.pipeline_mode<synchronous>, transform_indices = @transform_5, window_bounds = array<i64: 2, 32, 64>}, {pipeline_mode = #tpu.pipeline_mode<synchronous>, transform_indices = @transform_6, window_bounds = array<i64: 2, 64, 32>}, {pipeline_mode = #tpu.pipeline_mode<synchronous>, transform_indices = @transform_7, window_bounds = array<i64: 2, 8, 96>}, {pipeline_mode = #tpu.pipeline_mode<synchronous>, transform_indices = @transform_8, window_bounds = array<i64: 32, 16>}, {pipeline_mode = #tpu.pipeline_mode<synchronous>, transform_indices = @transform_9, window_bounds = array<i64: 1, 16>}, {transform_indices = @transform_10, window_bounds = array<i64: 1, 2, 16>}]} {
    %c0 = arith.constant 0 : index
    %c0_0 = arith.constant 0 : index
    %c0_1 = arith.constant 0 : index
    %0 = vector.load %arg1[%c0, %c0_0, %c0_1] : memref<2x8x32xf32, #tpu.memory_space<vmem>>, vector<2x8x32xf32>
    %c0_2 = arith.constant 0 : index
    %c0_3 = arith.constant 0 : index
    %1 = vector.load %arg2[%c0_2, %c0_3] : memref<8x32xf32, #tpu.memory_space<vmem>>, vector<8x32xf32>
    %2 = vector.shape_cast %1 : vector<8x32xf32> to vector<1x8x32xf32>
    %3 = vector.broadcast %2 : vector<1x8x32xf32> to vector<2x8x32xf32>
    %4 = arith.addf %0, %3 : vector<2x8x32xf32>
    %5 = vector.shape_cast %4 : vector<2x8x32xf32> to vector<16x32xf32>
    %c0_4 = arith.constant 0 : index
    %c0_5 = arith.constant 0 : index
    %c0_6 = arith.constant 0 : index
    %6 = vector.load %arg3[%c0_4, %c0_5, %c0_6] : memref<2x1x8xf32, #tpu.memory_space<vmem>>, vector<2x1x8xf32>
    %c0_7 = arith.constant 0 : index
    %c0_8 = arith.constant 0 : index
    %c0_9 = arith.constant 0 : index
    %7 = vector.load %arg8[%c0_7, %c0_8, %c0_9] : memref<2x8x96xf32, #tpu.memory_space<vmem>>, vector<1x8x96xf32>
    %8 = vector.shape_cast %7 : vector<1x8x96xf32> to vector<8x96xf32>
    %9 = vector.extract_strided_slice %8 {offsets = [0, 0], sizes = [1, 96], strides = [1, 1]} : vector<8x96xf32> to vector<1x96xf32>
    %10 = vector.extract_strided_slice %8 {offsets = [1, 0], sizes = [1, 32], strides = [1, 1]} : vector<8x96xf32> to vector<1x32xf32>
    %11 = vector.extract_strided_slice %8 {offsets = [2, 0], sizes = [1, 32], strides = [1, 1]} : vector<8x96xf32> to vector<1x32xf32>
    %12 = vector.extract_strided_slice %8 {offsets = [3, 0], sizes = [1, 32], strides = [1, 1]} : vector<8x96xf32> to vector<1x32xf32>
    %13 = vector.extract_strided_slice %8 {offsets = [4, 0], sizes = [1, 64], strides = [1, 1]} : vector<8x96xf32> to vector<1x64xf32>
    %14 = vector.extract_strided_slice %8 {offsets = [5, 0], sizes = [1, 32], strides = [1, 1]} : vector<8x96xf32> to vector<1x32xf32>
    %15 = vector.extract_strided_slice %8 {offsets = [6, 0], sizes = [1, 32], strides = [1, 1]} : vector<8x96xf32> to vector<1x32xf32>
    %16 = vector.extract_strided_slice %8 {offsets = [7, 0], sizes = [1, 32], strides = [1, 1]} : vector<8x96xf32> to vector<1x32xf32>
    %c0_10 = arith.constant 0 : index
    %c0_11 = arith.constant 0 : index
    %c0_12 = arith.constant 0 : index
    %17 = vector.load %arg4[%c0_10, %c0_11, %c0_12] : memref<2x32x96xbf16, #tpu.memory_space<vmem>>, vector<1x32x96xbf16>
    %18 = vector.shape_cast %17 : vector<1x32x96xbf16> to vector<32x96xbf16>
    %19 = arith.truncf %5 : vector<16x32xf32> to vector<16x32xbf16>
    %cst = arith.constant dense<0.000000e+00> : vector<16x96xf32>
    %20 = tpu.matmul %19, %18, %cst {dimension_numbers = #tpu.dot_dimension_numbers<[1], [0], [0], [1], [0, 0, 1, 1], [], []>} : vector<16x32xbf16>, vector<32x96xbf16>, vector<16x96xf32> -> vector<16x96xf32>
    %21 = vector.broadcast %9 : vector<1x96xf32> to vector<16x96xf32>
    %22 = arith.addf %20, %21 : vector<16x96xf32>
    %23 = vector.shape_cast %22 : vector<16x96xf32> to vector<2x8x96xf32>
    %24 = vector.extract_strided_slice %23 {offsets = [0, 0, 0], sizes = [2, 8, 8], strides = [1, 1, 1]} : vector<2x8x96xf32> to vector<2x8x8xf32>
    %25 = vector.extract_strided_slice %23 {offsets = [0, 0, 32], sizes = [2, 8, 8], strides = [1, 1, 1]} : vector<2x8x96xf32> to vector<2x8x8xf32>
    %26 = vector.extract_strided_slice %23 {offsets = [0, 0, 64], sizes = [2, 8, 8], strides = [1, 1, 1]} : vector<2x8x96xf32> to vector<2x8x8xf32>
    %27 = arith.truncf %24 : vector<2x8x8xf32> to vector<2x8x8xbf16>
    %28 = arith.truncf %25 : vector<2x8x8xf32> to vector<2x8x8xbf16>
    "tpu.trace_start"() <{level = 10 : i32, message = "bqd,bkd->bqk"}> : () -> ()
    %cst_13 = arith.constant dense<0.000000e+00> : vector<2x8x8xf32>
    %29 = tpu.matmul %27, %28, %cst_13 {dimension_numbers = #tpu.dot_dimension_numbers<[2], [2], [1], [1], [0, 0, 0, 1, 1, 1], [0], [0]>} : vector<2x8x8xbf16>, vector<2x8x8xbf16>, vector<2x8x8xf32> -> vector<2x8x8xf32>
    "tpu.trace_stop"() : () -> ()
    %cst_14 = arith.constant 0.353553385 : f32
    %30 = vector.broadcast %cst_14 : f32 to vector<2x8x8xf32>
    %31 = arith.mulf %29, %30 : vector<2x8x8xf32>
    %32 = vector.broadcast %6 : vector<2x1x8xf32> to vector<2x8x8xf32>
    %33 = arith.addf %31, %32 : vector<2x8x8xf32>
    %cst_15 = arith.constant dense<0xFF800000> : vector<2x8xf32>
    %34 = vector.multi_reduction <maximumf>, %33, %cst_15 [2] : vector<2x8x8xf32> to vector<2x8xf32>
    %35 = vector.shape_cast %34 : vector<2x8xf32> to vector<2x8x1xf32>
    %36 = vector.broadcast %35 : vector<2x8x1xf32> to vector<2x8x8xf32>
    %37 = arith.subf %33, %36 : vector<2x8x8xf32>
    %38 = math.exp %37 : vector<2x8x8xf32>
    %cst_16 = arith.constant dense<0.000000e+00> : vector<2x8xf32>
    %39 = vector.multi_reduction <add>, %38, %cst_16 [2] : vector<2x8x8xf32> to vector<2x8xf32>
    %40 = vector.shape_cast %39 : vector<2x8xf32> to vector<2x8x1xf32>
    %41 = tpu.reciprocal %40 {approx = true} : vector<2x8x1xf32> -> vector<2x8x1xf32>
    %42 = vector.broadcast %41 : vector<2x8x1xf32> to vector<2x8x8xf32>
    %43 = arith.mulf %38, %42 : vector<2x8x8xf32>
    %44 = arith.truncf %43 : vector<2x8x8xf32> to vector<2x8x8xbf16>
    %45 = arith.truncf %26 : vector<2x8x8xf32> to vector<2x8x8xbf16>
    "tpu.trace_start"() <{level = 10 : i32, message = "bqk,bkd->bqd"}> : () -> ()
    %cst_17 = arith.constant dense<0.000000e+00> : vector<2x8x8xf32>
    %46 = tpu.matmul %44, %45, %cst_17 {dimension_numbers = #tpu.dot_dimension_numbers<[2], [1], [1], [2], [0, 0, 0, 1, 1, 2], [0], [0]>} : vector<2x8x8xbf16>, vector<2x8x8xbf16>, vector<2x8x8xf32> -> vector<2x8x8xf32>
    "tpu.trace_stop"() : () -> ()
    %47 = vector.extract_strided_slice %23 {offsets = [0, 0, 8], sizes = [2, 8, 8], strides = [1, 1, 1]} : vector<2x8x96xf32> to vector<2x8x8xf32>
    %48 = vector.extract_strided_slice %23 {offsets = [0, 0, 40], sizes = [2, 8, 8], strides = [1, 1, 1]} : vector<2x8x96xf32> to vector<2x8x8xf32>
    %49 = vector.extract_strided_slice %23 {offsets = [0, 0, 72], sizes = [2, 8, 8], strides = [1, 1, 1]} : vector<2x8x96xf32> to vector<2x8x8xf32>
    %50 = arith.truncf %47 : vector<2x8x8xf32> to vector<2x8x8xbf16>
    %51 = arith.truncf %48 : vector<2x8x8xf32> to vector<2x8x8xbf16>
    "tpu.trace_start"() <{level = 10 : i32, message = "bqd,bkd->bqk"}> : () -> ()
    %cst_18 = arith.constant dense<0.000000e+00> : vector<2x8x8xf32>
    %52 = tpu.matmul %50, %51, %cst_18 {dimension_numbers = #tpu.dot_dimension_numbers<[2], [2], [1], [1], [0, 0, 0, 1, 1, 1], [0], [0]>} : vector<2x8x8xbf16>, vector<2x8x8xbf16>, vector<2x8x8xf32> -> vector<2x8x8xf32>
    "tpu.trace_stop"() : () -> ()
    %cst_19 = arith.constant 0.353553385 : f32
    %53 = vector.broadcast %cst_19 : f32 to vector<2x8x8xf32>
    %54 = arith.mulf %52, %53 : vector<2x8x8xf32>
    %55 = vector.broadcast %6 : vector<2x1x8xf32> to vector<2x8x8xf32>
    %56 = arith.addf %54, %55 : vector<2x8x8xf32>
    %cst_20 = arith.constant dense<0xFF800000> : vector<2x8xf32>
    %57 = vector.multi_reduction <maximumf>, %56, %cst_20 [2] : vector<2x8x8xf32> to vector<2x8xf32>
    %58 = vector.shape_cast %57 : vector<2x8xf32> to vector<2x8x1xf32>
    %59 = vector.broadcast %58 : vector<2x8x1xf32> to vector<2x8x8xf32>
    %60 = arith.subf %56, %59 : vector<2x8x8xf32>
    %61 = math.exp %60 : vector<2x8x8xf32>
    %cst_21 = arith.constant dense<0.000000e+00> : vector<2x8xf32>
    %62 = vector.multi_reduction <add>, %61, %cst_21 [2] : vector<2x8x8xf32> to vector<2x8xf32>
    %63 = vector.shape_cast %62 : vector<2x8xf32> to vector<2x8x1xf32>
    %64 = tpu.reciprocal %63 {approx = true} : vector<2x8x1xf32> -> vector<2x8x1xf32>
    %65 = vector.broadcast %64 : vector<2x8x1xf32> to vector<2x8x8xf32>
    %66 = arith.mulf %61, %65 : vector<2x8x8xf32>
    %67 = arith.truncf %66 : vector<2x8x8xf32> to vector<2x8x8xbf16>
    %68 = arith.truncf %49 : vector<2x8x8xf32> to vector<2x8x8xbf16>
    "tpu.trace_start"() <{level = 10 : i32, message = "bqk,bkd->bqd"}> : () -> ()
    %cst_22 = arith.constant dense<0.000000e+00> : vector<2x8x8xf32>
    %69 = tpu.matmul %67, %68, %cst_22 {dimension_numbers = #tpu.dot_dimension_numbers<[2], [1], [1], [2], [0, 0, 0, 1, 1, 2], [0], [0]>} : vector<2x8x8xbf16>, vector<2x8x8xbf16>, vector<2x8x8xf32> -> vector<2x8x8xf32>
    "tpu.trace_stop"() : () -> ()
    %70 = vector.extract_strided_slice %23 {offsets = [0, 0, 16], sizes = [2, 8, 8], strides = [1, 1, 1]} : vector<2x8x96xf32> to vector<2x8x8xf32>
    %71 = vector.extract_strided_slice %23 {offsets = [0, 0, 48], sizes = [2, 8, 8], strides = [1, 1, 1]} : vector<2x8x96xf32> to vector<2x8x8xf32>
    %72 = vector.extract_strided_slice %23 {offsets = [0, 0, 80], sizes = [2, 8, 8], strides = [1, 1, 1]} : vector<2x8x96xf32> to vector<2x8x8xf32>
    %73 = arith.truncf %70 : vector<2x8x8xf32> to vector<2x8x8xbf16>
    %74 = arith.truncf %71 : vector<2x8x8xf32> to vector<2x8x8xbf16>
    "tpu.trace_start"() <{level = 10 : i32, message = "bqd,bkd->bqk"}> : () -> ()
    %cst_23 = arith.constant dense<0.000000e+00> : vector<2x8x8xf32>
    %75 = tpu.matmul %73, %74, %cst_23 {dimension_numbers = #tpu.dot_dimension_numbers<[2], [2], [1], [1], [0, 0, 0, 1, 1, 1], [0], [0]>} : vector<2x8x8xbf16>, vector<2x8x8xbf16>, vector<2x8x8xf32> -> vector<2x8x8xf32>
    "tpu.trace_stop"() : () -> ()
    %cst_24 = arith.constant 0.353553385 : f32
    %76 = vector.broadcast %cst_24 : f32 to vector<2x8x8xf32>
    %77 = arith.mulf %75, %76 : vector<2x8x8xf32>
    %78 = vector.broadcast %6 : vector<2x1x8xf32> to vector<2x8x8xf32>
    %79 = arith.addf %77, %78 : vector<2x8x8xf32>
    %cst_25 = arith.constant dense<0xFF800000> : vector<2x8xf32>
    %80 = vector.multi_reduction <maximumf>, %79, %cst_25 [2] : vector<2x8x8xf32> to vector<2x8xf32>
    %81 = vector.shape_cast %80 : vector<2x8xf32> to vector<2x8x1xf32>
    %82 = vector.broadcast %81 : vector<2x8x1xf32> to vector<2x8x8xf32>
    %83 = arith.subf %79, %82 : vector<2x8x8xf32>
    %84 = math.exp %83 : vector<2x8x8xf32>
    %cst_26 = arith.constant dense<0.000000e+00> : vector<2x8xf32>
    %85 = vector.multi_reduction <add>, %84, %cst_26 [2] : vector<2x8x8xf32> to vector<2x8xf32>
    %86 = vector.shape_cast %85 : vector<2x8xf32> to vector<2x8x1xf32>
    %87 = tpu.reciprocal %86 {approx = true} : vector<2x8x1xf32> -> vector<2x8x1xf32>
    %88 = vector.broadcast %87 : vector<2x8x1xf32> to vector<2x8x8xf32>
    %89 = arith.mulf %84, %88 : vector<2x8x8xf32>
    %90 = arith.truncf %89 : vector<2x8x8xf32> to vector<2x8x8xbf16>
    %91 = arith.truncf %72 : vector<2x8x8xf32> to vector<2x8x8xbf16>
    "tpu.trace_start"() <{level = 10 : i32, message = "bqk,bkd->bqd"}> : () -> ()
    %cst_27 = arith.constant dense<0.000000e+00> : vector<2x8x8xf32>
    %92 = tpu.matmul %90, %91, %cst_27 {dimension_numbers = #tpu.dot_dimension_numbers<[2], [1], [1], [2], [0, 0, 0, 1, 1, 2], [0], [0]>} : vector<2x8x8xbf16>, vector<2x8x8xbf16>, vector<2x8x8xf32> -> vector<2x8x8xf32>
    "tpu.trace_stop"() : () -> ()
    %93 = vector.extract_strided_slice %23 {offsets = [0, 0, 24], sizes = [2, 8, 8], strides = [1, 1, 1]} : vector<2x8x96xf32> to vector<2x8x8xf32>
    %94 = vector.extract_strided_slice %23 {offsets = [0, 0, 56], sizes = [2, 8, 8], strides = [1, 1, 1]} : vector<2x8x96xf32> to vector<2x8x8xf32>
    %95 = vector.extract_strided_slice %23 {offsets = [0, 0, 88], sizes = [2, 8, 8], strides = [1, 1, 1]} : vector<2x8x96xf32> to vector<2x8x8xf32>
    %96 = arith.truncf %93 : vector<2x8x8xf32> to vector<2x8x8xbf16>
    %97 = arith.truncf %94 : vector<2x8x8xf32> to vector<2x8x8xbf16>
    "tpu.trace_start"() <{level = 10 : i32, message = "bqd,bkd->bqk"}> : () -> ()
    %cst_28 = arith.constant dense<0.000000e+00> : vector<2x8x8xf32>
    %98 = tpu.matmul %96, %97, %cst_28 {dimension_numbers = #tpu.dot_dimension_numbers<[2], [2], [1], [1], [0, 0, 0, 1, 1, 1], [0], [0]>} : vector<2x8x8xbf16>, vector<2x8x8xbf16>, vector<2x8x8xf32> -> vector<2x8x8xf32>
    "tpu.trace_stop"() : () -> ()
    %cst_29 = arith.constant 0.353553385 : f32
    %99 = vector.broadcast %cst_29 : f32 to vector<2x8x8xf32>
    %100 = arith.mulf %98, %99 : vector<2x8x8xf32>
    %101 = vector.broadcast %6 : vector<2x1x8xf32> to vector<2x8x8xf32>
    %102 = arith.addf %100, %101 : vector<2x8x8xf32>
    %cst_30 = arith.constant dense<0xFF800000> : vector<2x8xf32>
    %103 = vector.multi_reduction <maximumf>, %102, %cst_30 [2] : vector<2x8x8xf32> to vector<2x8xf32>
    %104 = vector.shape_cast %103 : vector<2x8xf32> to vector<2x8x1xf32>
    %105 = vector.broadcast %104 : vector<2x8x1xf32> to vector<2x8x8xf32>
    %106 = arith.subf %102, %105 : vector<2x8x8xf32>
    %107 = math.exp %106 : vector<2x8x8xf32>
    %cst_31 = arith.constant dense<0.000000e+00> : vector<2x8xf32>
    %108 = vector.multi_reduction <add>, %107, %cst_31 [2] : vector<2x8x8xf32> to vector<2x8xf32>
    %109 = vector.shape_cast %108 : vector<2x8xf32> to vector<2x8x1xf32>
    %110 = tpu.reciprocal %109 {approx = true} : vector<2x8x1xf32> -> vector<2x8x1xf32>
    %111 = vector.broadcast %110 : vector<2x8x1xf32> to vector<2x8x8xf32>
    %112 = arith.mulf %107, %111 : vector<2x8x8xf32>
    %113 = arith.truncf %112 : vector<2x8x8xf32> to vector<2x8x8xbf16>
    %114 = arith.truncf %95 : vector<2x8x8xf32> to vector<2x8x8xbf16>
    "tpu.trace_start"() <{level = 10 : i32, message = "bqk,bkd->bqd"}> : () -> ()
    %cst_32 = arith.constant dense<0.000000e+00> : vector<2x8x8xf32>
    %115 = tpu.matmul %113, %114, %cst_32 {dimension_numbers = #tpu.dot_dimension_numbers<[2], [1], [1], [2], [0, 0, 0, 1, 1, 2], [0], [0]>} : vector<2x8x8xbf16>, vector<2x8x8xbf16>, vector<2x8x8xf32> -> vector<2x8x8xf32>
    "tpu.trace_stop"() : () -> ()
    %116 = tpu.concatenate %46, %69, %92, %115 in 2 : vector<2x8x8xf32>, vector<2x8x8xf32>, vector<2x8x8xf32>, vector<2x8x8xf32> -> vector<2x8x32xf32>
    %117 = vector.shape_cast %116 : vector<2x8x32xf32> to vector<16x32xf32>
    %c0_33 = arith.constant 0 : index
    %c0_34 = arith.constant 0 : index
    %c0_35 = arith.constant 0 : index
    %118 = vector.load %arg5[%c0_33, %c0_34, %c0_35] : memref<2x32x32xbf16, #tpu.memory_space<vmem>>, vector<1x32x32xbf16>
    %119 = vector.shape_cast %118 : vector<1x32x32xbf16> to vector<32x32xbf16>
    %120 = arith.truncf %117 : vector<16x32xf32> to vector<16x32xbf16>
    %cst_36 = arith.constant dense<0.000000e+00> : vector<16x32xf32>
    %121 = tpu.matmul %120, %119, %cst_36 {dimension_numbers = #tpu.dot_dimension_numbers<[1], [0], [0], [1], [0, 0, 1, 1], [], []>} : vector<16x32xbf16>, vector<32x32xbf16>, vector<16x32xf32> -> vector<16x32xf32>
    %122 = vector.broadcast %10 : vector<1x32xf32> to vector<16x32xf32>
    %123 = arith.addf %121, %122 : vector<16x32xf32>
    %124 = arith.addf %5, %123 : vector<16x32xf32>
    %cst_37 = arith.constant dense<0.000000e+00> : vector<16xf32>
    %125 = vector.multi_reduction <add>, %124, %cst_37 [1] : vector<16x32xf32> to vector<16xf32>
    %126 = vector.shape_cast %125 : vector<16xf32> to vector<16x1xf32>
    %cst_38 = arith.constant 3.200000e+01 : f32
    %127 = vector.broadcast %cst_38 : f32 to vector<16x1xf32>
    %128 = arith.divf %126, %127 : vector<16x1xf32>
    %129 = vector.broadcast %128 : vector<16x1xf32> to vector<16x32xf32>
    %130 = arith.subf %124, %129 : vector<16x32xf32>
    %131 = arith.mulf %130, %130 : vector<16x32xf32>
    %cst_39 = arith.constant dense<0.000000e+00> : vector<16xf32>
    %132 = vector.multi_reduction <add>, %131, %cst_39 [1] : vector<16x32xf32> to vector<16xf32>
    %133 = vector.shape_cast %132 : vector<16xf32> to vector<16x1xf32>
    %cst_40 = arith.constant 3.200000e+01 : f32
    %134 = vector.broadcast %cst_40 : f32 to vector<16x1xf32>
    %135 = arith.divf %133, %134 : vector<16x1xf32>
    %136 = vector.broadcast %128 : vector<16x1xf32> to vector<16x32xf32>
    %137 = arith.subf %124, %136 : vector<16x32xf32>
    %cst_41 = arith.constant 9.99999974E-6 : f32
    %138 = vector.broadcast %cst_41 : f32 to vector<16x1xf32>
    %139 = arith.addf %135, %138 : vector<16x1xf32>
    %140 = math.rsqrt %139 : vector<16x1xf32>
    %141 = vector.broadcast %140 : vector<16x1xf32> to vector<16x32xf32>
    %142 = arith.mulf %137, %141 : vector<16x32xf32>
    %143 = vector.broadcast %11 : vector<1x32xf32> to vector<16x32xf32>
    %144 = arith.mulf %142, %143 : vector<16x32xf32>
    %145 = vector.broadcast %12 : vector<1x32xf32> to vector<16x32xf32>
    %146 = arith.addf %144, %145 : vector<16x32xf32>
    %c0_42 = arith.constant 0 : index
    %c0_43 = arith.constant 0 : index
    %c0_44 = arith.constant 0 : index
    %147 = vector.load %arg6[%c0_42, %c0_43, %c0_44] : memref<2x32x64xbf16, #tpu.memory_space<vmem>>, vector<1x32x64xbf16>
    %148 = vector.shape_cast %147 : vector<1x32x64xbf16> to vector<32x64xbf16>
    %149 = arith.truncf %146 : vector<16x32xf32> to vector<16x32xbf16>
    %cst_45 = arith.constant dense<0.000000e+00> : vector<16x64xf32>
    %150 = tpu.matmul %149, %148, %cst_45 {dimension_numbers = #tpu.dot_dimension_numbers<[1], [0], [0], [1], [0, 0, 1, 1], [], []>} : vector<16x32xbf16>, vector<32x64xbf16>, vector<16x64xf32> -> vector<16x64xf32>
    %151 = vector.broadcast %13 : vector<1x64xf32> to vector<16x64xf32>
    %152 = arith.addf %150, %151 : vector<16x64xf32>
    %cst_46 = arith.constant 0.000000e+00 : f32
    %153 = vector.broadcast %cst_46 : f32 to vector<16x64xf32>
    %154 = arith.maximumf %152, %153 : vector<16x64xf32>
    %c0_47 = arith.constant 0 : index
    %c0_48 = arith.constant 0 : index
    %c0_49 = arith.constant 0 : index
    %155 = vector.load %arg7[%c0_47, %c0_48, %c0_49] : memref<2x64x32xbf16, #tpu.memory_space<vmem>>, vector<1x64x32xbf16>
    %156 = vector.shape_cast %155 : vector<1x64x32xbf16> to vector<64x32xbf16>
    %157 = arith.truncf %154 : vector<16x64xf32> to vector<16x64xbf16>
    %cst_50 = arith.constant dense<0.000000e+00> : vector<16x32xf32>
    %158 = tpu.matmul %157, %156, %cst_50 {dimension_numbers = #tpu.dot_dimension_numbers<[1], [0], [0], [1], [0, 0, 1, 1], [], []>} : vector<16x64xbf16>, vector<64x32xbf16>, vector<16x32xf32> -> vector<16x32xf32>
    %159 = vector.broadcast %14 : vector<1x32xf32> to vector<16x32xf32>
    %160 = arith.addf %158, %159 : vector<16x32xf32>
    %161 = arith.addf %146, %160 : vector<16x32xf32>
    %cst_51 = arith.constant dense<0.000000e+00> : vector<16xf32>
    %162 = vector.multi_reduction <add>, %161, %cst_51 [1] : vector<16x32xf32> to vector<16xf32>
    %163 = vector.shape_cast %162 : vector<16xf32> to vector<16x1xf32>
    %cst_52 = arith.constant 3.200000e+01 : f32
    %164 = vector.broadcast %cst_52 : f32 to vector<16x1xf32>
    %165 = arith.divf %163, %164 : vector<16x1xf32>
    %166 = vector.broadcast %165 : vector<16x1xf32> to vector<16x32xf32>
    %167 = arith.subf %161, %166 : vector<16x32xf32>
    %168 = arith.mulf %167, %167 : vector<16x32xf32>
    %cst_53 = arith.constant dense<0.000000e+00> : vector<16xf32>
    %169 = vector.multi_reduction <add>, %168, %cst_53 [1] : vector<16x32xf32> to vector<16xf32>
    %170 = vector.shape_cast %169 : vector<16xf32> to vector<16x1xf32>
    %cst_54 = arith.constant 3.200000e+01 : f32
    %171 = vector.broadcast %cst_54 : f32 to vector<16x1xf32>
    %172 = arith.divf %170, %171 : vector<16x1xf32>
    %173 = vector.broadcast %165 : vector<16x1xf32> to vector<16x32xf32>
    %174 = arith.subf %161, %173 : vector<16x32xf32>
    %cst_55 = arith.constant 9.99999974E-6 : f32
    %175 = vector.broadcast %cst_55 : f32 to vector<16x1xf32>
    %176 = arith.addf %172, %175 : vector<16x1xf32>
    %177 = math.rsqrt %176 : vector<16x1xf32>
    %178 = vector.broadcast %177 : vector<16x1xf32> to vector<16x32xf32>
    %179 = arith.mulf %174, %178 : vector<16x32xf32>
    %180 = vector.broadcast %15 : vector<1x32xf32> to vector<16x32xf32>
    %181 = arith.mulf %179, %180 : vector<16x32xf32>
    %182 = vector.broadcast %16 : vector<1x32xf32> to vector<16x32xf32>
    %183 = arith.addf %181, %182 : vector<16x32xf32>
    %c1 = arith.constant 1 : index
    %c0_56 = arith.constant 0 : index
    %c0_57 = arith.constant 0 : index
    %184 = vector.load %arg8[%c1, %c0_56, %c0_57] : memref<2x8x96xf32, #tpu.memory_space<vmem>>, vector<1x8x96xf32>
    %185 = vector.shape_cast %184 : vector<1x8x96xf32> to vector<8x96xf32>
    %186 = vector.extract_strided_slice %185 {offsets = [0, 0], sizes = [1, 96], strides = [1, 1]} : vector<8x96xf32> to vector<1x96xf32>
    %187 = vector.extract_strided_slice %185 {offsets = [1, 0], sizes = [1, 32], strides = [1, 1]} : vector<8x96xf32> to vector<1x32xf32>
    %188 = vector.extract_strided_slice %185 {offsets = [2, 0], sizes = [1, 32], strides = [1, 1]} : vector<8x96xf32> to vector<1x32xf32>
    %189 = vector.extract_strided_slice %185 {offsets = [3, 0], sizes = [1, 32], strides = [1, 1]} : vector<8x96xf32> to vector<1x32xf32>
    %190 = vector.extract_strided_slice %185 {offsets = [4, 0], sizes = [1, 64], strides = [1, 1]} : vector<8x96xf32> to vector<1x64xf32>
    %191 = vector.extract_strided_slice %185 {offsets = [5, 0], sizes = [1, 32], strides = [1, 1]} : vector<8x96xf32> to vector<1x32xf32>
    %192 = vector.extract_strided_slice %185 {offsets = [6, 0], sizes = [1, 32], strides = [1, 1]} : vector<8x96xf32> to vector<1x32xf32>
    %193 = vector.extract_strided_slice %185 {offsets = [7, 0], sizes = [1, 32], strides = [1, 1]} : vector<8x96xf32> to vector<1x32xf32>
    %c1_58 = arith.constant 1 : index
    %c0_59 = arith.constant 0 : index
    %c0_60 = arith.constant 0 : index
    %194 = vector.load %arg4[%c1_58, %c0_59, %c0_60] : memref<2x32x96xbf16, #tpu.memory_space<vmem>>, vector<1x32x96xbf16>
    %195 = vector.shape_cast %194 : vector<1x32x96xbf16> to vector<32x96xbf16>
    %196 = arith.truncf %183 : vector<16x32xf32> to vector<16x32xbf16>
    %cst_61 = arith.constant dense<0.000000e+00> : vector<16x96xf32>
    %197 = tpu.matmul %196, %195, %cst_61 {dimension_numbers = #tpu.dot_dimension_numbers<[1], [0], [0], [1], [0, 0, 1, 1], [], []>} : vector<16x32xbf16>, vector<32x96xbf16>, vector<16x96xf32> -> vector<16x96xf32>
    %198 = vector.broadcast %186 : vector<1x96xf32> to vector<16x96xf32>
    %199 = arith.addf %197, %198 : vector<16x96xf32>
    %200 = vector.shape_cast %199 : vector<16x96xf32> to vector<2x8x96xf32>
    %201 = vector.extract_strided_slice %200 {offsets = [0, 0, 0], sizes = [2, 8, 8], strides = [1, 1, 1]} : vector<2x8x96xf32> to vector<2x8x8xf32>
    %202 = vector.extract_strided_slice %200 {offsets = [0, 0, 32], sizes = [2, 8, 8], strides = [1, 1, 1]} : vector<2x8x96xf32> to vector<2x8x8xf32>
    %203 = vector.extract_strided_slice %200 {offsets = [0, 0, 64], sizes = [2, 8, 8], strides = [1, 1, 1]} : vector<2x8x96xf32> to vector<2x8x8xf32>
    %204 = arith.truncf %201 : vector<2x8x8xf32> to vector<2x8x8xbf16>
    %205 = arith.truncf %202 : vector<2x8x8xf32> to vector<2x8x8xbf16>
    "tpu.trace_start"() <{level = 10 : i32, message = "bqd,bkd->bqk"}> : () -> ()
    %cst_62 = arith.constant dense<0.000000e+00> : vector<2x8x8xf32>
    %206 = tpu.matmul %204, %205, %cst_62 {dimension_numbers = #tpu.dot_dimension_numbers<[2], [2], [1], [1], [0, 0, 0, 1, 1, 1], [0], [0]>} : vector<2x8x8xbf16>, vector<2x8x8xbf16>, vector<2x8x8xf32> -> vector<2x8x8xf32>
    "tpu.trace_stop"() : () -> ()
    %cst_63 = arith.constant 0.353553385 : f32
    %207 = vector.broadcast %cst_63 : f32 to vector<2x8x8xf32>
    %208 = arith.mulf %206, %207 : vector<2x8x8xf32>
    %209 = vector.broadcast %6 : vector<2x1x8xf32> to vector<2x8x8xf32>
    %210 = arith.addf %208, %209 : vector<2x8x8xf32>
    %cst_64 = arith.constant dense<0xFF800000> : vector<2x8xf32>
    %211 = vector.multi_reduction <maximumf>, %210, %cst_64 [2] : vector<2x8x8xf32> to vector<2x8xf32>
    %212 = vector.shape_cast %211 : vector<2x8xf32> to vector<2x8x1xf32>
    %213 = vector.broadcast %212 : vector<2x8x1xf32> to vector<2x8x8xf32>
    %214 = arith.subf %210, %213 : vector<2x8x8xf32>
    %215 = math.exp %214 : vector<2x8x8xf32>
    %cst_65 = arith.constant dense<0.000000e+00> : vector<2x8xf32>
    %216 = vector.multi_reduction <add>, %215, %cst_65 [2] : vector<2x8x8xf32> to vector<2x8xf32>
    %217 = vector.shape_cast %216 : vector<2x8xf32> to vector<2x8x1xf32>
    %218 = tpu.reciprocal %217 {approx = true} : vector<2x8x1xf32> -> vector<2x8x1xf32>
    %219 = vector.broadcast %218 : vector<2x8x1xf32> to vector<2x8x8xf32>
    %220 = arith.mulf %215, %219 : vector<2x8x8xf32>
    %221 = arith.truncf %220 : vector<2x8x8xf32> to vector<2x8x8xbf16>
    %222 = arith.truncf %203 : vector<2x8x8xf32> to vector<2x8x8xbf16>
    "tpu.trace_start"() <{level = 10 : i32, message = "bqk,bkd->bqd"}> : () -> ()
    %cst_66 = arith.constant dense<0.000000e+00> : vector<2x8x8xf32>
    %223 = tpu.matmul %221, %222, %cst_66 {dimension_numbers = #tpu.dot_dimension_numbers<[2], [1], [1], [2], [0, 0, 0, 1, 1, 2], [0], [0]>} : vector<2x8x8xbf16>, vector<2x8x8xbf16>, vector<2x8x8xf32> -> vector<2x8x8xf32>
    "tpu.trace_stop"() : () -> ()
    %224 = vector.extract_strided_slice %200 {offsets = [0, 0, 8], sizes = [2, 8, 8], strides = [1, 1, 1]} : vector<2x8x96xf32> to vector<2x8x8xf32>
    %225 = vector.extract_strided_slice %200 {offsets = [0, 0, 40], sizes = [2, 8, 8], strides = [1, 1, 1]} : vector<2x8x96xf32> to vector<2x8x8xf32>
    %226 = vector.extract_strided_slice %200 {offsets = [0, 0, 72], sizes = [2, 8, 8], strides = [1, 1, 1]} : vector<2x8x96xf32> to vector<2x8x8xf32>
    %227 = arith.truncf %224 : vector<2x8x8xf32> to vector<2x8x8xbf16>
    %228 = arith.truncf %225 : vector<2x8x8xf32> to vector<2x8x8xbf16>
    "tpu.trace_start"() <{level = 10 : i32, message = "bqd,bkd->bqk"}> : () -> ()
    %cst_67 = arith.constant dense<0.000000e+00> : vector<2x8x8xf32>
    %229 = tpu.matmul %227, %228, %cst_67 {dimension_numbers = #tpu.dot_dimension_numbers<[2], [2], [1], [1], [0, 0, 0, 1, 1, 1], [0], [0]>} : vector<2x8x8xbf16>, vector<2x8x8xbf16>, vector<2x8x8xf32> -> vector<2x8x8xf32>
    "tpu.trace_stop"() : () -> ()
    %cst_68 = arith.constant 0.353553385 : f32
    %230 = vector.broadcast %cst_68 : f32 to vector<2x8x8xf32>
    %231 = arith.mulf %229, %230 : vector<2x8x8xf32>
    %232 = vector.broadcast %6 : vector<2x1x8xf32> to vector<2x8x8xf32>
    %233 = arith.addf %231, %232 : vector<2x8x8xf32>
    %cst_69 = arith.constant dense<0xFF800000> : vector<2x8xf32>
    %234 = vector.multi_reduction <maximumf>, %233, %cst_69 [2] : vector<2x8x8xf32> to vector<2x8xf32>
    %235 = vector.shape_cast %234 : vector<2x8xf32> to vector<2x8x1xf32>
    %236 = vector.broadcast %235 : vector<2x8x1xf32> to vector<2x8x8xf32>
    %237 = arith.subf %233, %236 : vector<2x8x8xf32>
    %238 = math.exp %237 : vector<2x8x8xf32>
    %cst_70 = arith.constant dense<0.000000e+00> : vector<2x8xf32>
    %239 = vector.multi_reduction <add>, %238, %cst_70 [2] : vector<2x8x8xf32> to vector<2x8xf32>
    %240 = vector.shape_cast %239 : vector<2x8xf32> to vector<2x8x1xf32>
    %241 = tpu.reciprocal %240 {approx = true} : vector<2x8x1xf32> -> vector<2x8x1xf32>
    %242 = vector.broadcast %241 : vector<2x8x1xf32> to vector<2x8x8xf32>
    %243 = arith.mulf %238, %242 : vector<2x8x8xf32>
    %244 = arith.truncf %243 : vector<2x8x8xf32> to vector<2x8x8xbf16>
    %245 = arith.truncf %226 : vector<2x8x8xf32> to vector<2x8x8xbf16>
    "tpu.trace_start"() <{level = 10 : i32, message = "bqk,bkd->bqd"}> : () -> ()
    %cst_71 = arith.constant dense<0.000000e+00> : vector<2x8x8xf32>
    %246 = tpu.matmul %244, %245, %cst_71 {dimension_numbers = #tpu.dot_dimension_numbers<[2], [1], [1], [2], [0, 0, 0, 1, 1, 2], [0], [0]>} : vector<2x8x8xbf16>, vector<2x8x8xbf16>, vector<2x8x8xf32> -> vector<2x8x8xf32>
    "tpu.trace_stop"() : () -> ()
    %247 = vector.extract_strided_slice %200 {offsets = [0, 0, 16], sizes = [2, 8, 8], strides = [1, 1, 1]} : vector<2x8x96xf32> to vector<2x8x8xf32>
    %248 = vector.extract_strided_slice %200 {offsets = [0, 0, 48], sizes = [2, 8, 8], strides = [1, 1, 1]} : vector<2x8x96xf32> to vector<2x8x8xf32>
    %249 = vector.extract_strided_slice %200 {offsets = [0, 0, 80], sizes = [2, 8, 8], strides = [1, 1, 1]} : vector<2x8x96xf32> to vector<2x8x8xf32>
    %250 = arith.truncf %247 : vector<2x8x8xf32> to vector<2x8x8xbf16>
    %251 = arith.truncf %248 : vector<2x8x8xf32> to vector<2x8x8xbf16>
    "tpu.trace_start"() <{level = 10 : i32, message = "bqd,bkd->bqk"}> : () -> ()
    %cst_72 = arith.constant dense<0.000000e+00> : vector<2x8x8xf32>
    %252 = tpu.matmul %250, %251, %cst_72 {dimension_numbers = #tpu.dot_dimension_numbers<[2], [2], [1], [1], [0, 0, 0, 1, 1, 1], [0], [0]>} : vector<2x8x8xbf16>, vector<2x8x8xbf16>, vector<2x8x8xf32> -> vector<2x8x8xf32>
    "tpu.trace_stop"() : () -> ()
    %cst_73 = arith.constant 0.353553385 : f32
    %253 = vector.broadcast %cst_73 : f32 to vector<2x8x8xf32>
    %254 = arith.mulf %252, %253 : vector<2x8x8xf32>
    %255 = vector.broadcast %6 : vector<2x1x8xf32> to vector<2x8x8xf32>
    %256 = arith.addf %254, %255 : vector<2x8x8xf32>
    %cst_74 = arith.constant dense<0xFF800000> : vector<2x8xf32>
    %257 = vector.multi_reduction <maximumf>, %256, %cst_74 [2] : vector<2x8x8xf32> to vector<2x8xf32>
    %258 = vector.shape_cast %257 : vector<2x8xf32> to vector<2x8x1xf32>
    %259 = vector.broadcast %258 : vector<2x8x1xf32> to vector<2x8x8xf32>
    %260 = arith.subf %256, %259 : vector<2x8x8xf32>
    %261 = math.exp %260 : vector<2x8x8xf32>
    %cst_75 = arith.constant dense<0.000000e+00> : vector<2x8xf32>
    %262 = vector.multi_reduction <add>, %261, %cst_75 [2] : vector<2x8x8xf32> to vector<2x8xf32>
    %263 = vector.shape_cast %262 : vector<2x8xf32> to vector<2x8x1xf32>
    %264 = tpu.reciprocal %263 {approx = true} : vector<2x8x1xf32> -> vector<2x8x1xf32>
    %265 = vector.broadcast %264 : vector<2x8x1xf32> to vector<2x8x8xf32>
    %266 = arith.mulf %261, %265 : vector<2x8x8xf32>
    %267 = arith.truncf %266 : vector<2x8x8xf32> to vector<2x8x8xbf16>
    %268 = arith.truncf %249 : vector<2x8x8xf32> to vector<2x8x8xbf16>
    "tpu.trace_start"() <{level = 10 : i32, message = "bqk,bkd->bqd"}> : () -> ()
    %cst_76 = arith.constant dense<0.000000e+00> : vector<2x8x8xf32>
    %269 = tpu.matmul %267, %268, %cst_76 {dimension_numbers = #tpu.dot_dimension_numbers<[2], [1], [1], [2], [0, 0, 0, 1, 1, 2], [0], [0]>} : vector<2x8x8xbf16>, vector<2x8x8xbf16>, vector<2x8x8xf32> -> vector<2x8x8xf32>
    "tpu.trace_stop"() : () -> ()
    %270 = vector.extract_strided_slice %200 {offsets = [0, 0, 24], sizes = [2, 8, 8], strides = [1, 1, 1]} : vector<2x8x96xf32> to vector<2x8x8xf32>
    %271 = vector.extract_strided_slice %200 {offsets = [0, 0, 56], sizes = [2, 8, 8], strides = [1, 1, 1]} : vector<2x8x96xf32> to vector<2x8x8xf32>
    %272 = vector.extract_strided_slice %200 {offsets = [0, 0, 88], sizes = [2, 8, 8], strides = [1, 1, 1]} : vector<2x8x96xf32> to vector<2x8x8xf32>
    %273 = arith.truncf %270 : vector<2x8x8xf32> to vector<2x8x8xbf16>
    %274 = arith.truncf %271 : vector<2x8x8xf32> to vector<2x8x8xbf16>
    "tpu.trace_start"() <{level = 10 : i32, message = "bqd,bkd->bqk"}> : () -> ()
    %cst_77 = arith.constant dense<0.000000e+00> : vector<2x8x8xf32>
    %275 = tpu.matmul %273, %274, %cst_77 {dimension_numbers = #tpu.dot_dimension_numbers<[2], [2], [1], [1], [0, 0, 0, 1, 1, 1], [0], [0]>} : vector<2x8x8xbf16>, vector<2x8x8xbf16>, vector<2x8x8xf32> -> vector<2x8x8xf32>
    "tpu.trace_stop"() : () -> ()
    %cst_78 = arith.constant 0.353553385 : f32
    %276 = vector.broadcast %cst_78 : f32 to vector<2x8x8xf32>
    %277 = arith.mulf %275, %276 : vector<2x8x8xf32>
    %278 = vector.broadcast %6 : vector<2x1x8xf32> to vector<2x8x8xf32>
    %279 = arith.addf %277, %278 : vector<2x8x8xf32>
    %cst_79 = arith.constant dense<0xFF800000> : vector<2x8xf32>
    %280 = vector.multi_reduction <maximumf>, %279, %cst_79 [2] : vector<2x8x8xf32> to vector<2x8xf32>
    %281 = vector.shape_cast %280 : vector<2x8xf32> to vector<2x8x1xf32>
    %282 = vector.broadcast %281 : vector<2x8x1xf32> to vector<2x8x8xf32>
    %283 = arith.subf %279, %282 : vector<2x8x8xf32>
    %284 = math.exp %283 : vector<2x8x8xf32>
    %cst_80 = arith.constant dense<0.000000e+00> : vector<2x8xf32>
    %285 = vector.multi_reduction <add>, %284, %cst_80 [2] : vector<2x8x8xf32> to vector<2x8xf32>
    %286 = vector.shape_cast %285 : vector<2x8xf32> to vector<2x8x1xf32>
    %287 = tpu.reciprocal %286 {approx = true} : vector<2x8x1xf32> -> vector<2x8x1xf32>
    %288 = vector.broadcast %287 : vector<2x8x1xf32> to vector<2x8x8xf32>
    %289 = arith.mulf %284, %288 : vector<2x8x8xf32>
    %290 = arith.truncf %289 : vector<2x8x8xf32> to vector<2x8x8xbf16>
    %291 = arith.truncf %272 : vector<2x8x8xf32> to vector<2x8x8xbf16>
    "tpu.trace_start"() <{level = 10 : i32, message = "bqk,bkd->bqd"}> : () -> ()
    %cst_81 = arith.constant dense<0.000000e+00> : vector<2x8x8xf32>
    %292 = tpu.matmul %290, %291, %cst_81 {dimension_numbers = #tpu.dot_dimension_numbers<[2], [1], [1], [2], [0, 0, 0, 1, 1, 2], [0], [0]>} : vector<2x8x8xbf16>, vector<2x8x8xbf16>, vector<2x8x8xf32> -> vector<2x8x8xf32>
    "tpu.trace_stop"() : () -> ()
    %293 = tpu.concatenate %223, %246, %269, %292 in 2 : vector<2x8x8xf32>, vector<2x8x8xf32>, vector<2x8x8xf32>, vector<2x8x8xf32> -> vector<2x8x32xf32>
    %294 = vector.shape_cast %293 : vector<2x8x32xf32> to vector<16x32xf32>
    %c1_82 = arith.constant 1 : index
    %c0_83 = arith.constant 0 : index
    %c0_84 = arith.constant 0 : index
    %295 = vector.load %arg5[%c1_82, %c0_83, %c0_84] : memref<2x32x32xbf16, #tpu.memory_space<vmem>>, vector<1x32x32xbf16>
    %296 = vector.shape_cast %295 : vector<1x32x32xbf16> to vector<32x32xbf16>
    %297 = arith.truncf %294 : vector<16x32xf32> to vector<16x32xbf16>
    %cst_85 = arith.constant dense<0.000000e+00> : vector<16x32xf32>
    %298 = tpu.matmul %297, %296, %cst_85 {dimension_numbers = #tpu.dot_dimension_numbers<[1], [0], [0], [1], [0, 0, 1, 1], [], []>} : vector<16x32xbf16>, vector<32x32xbf16>, vector<16x32xf32> -> vector<16x32xf32>
    %299 = vector.broadcast %187 : vector<1x32xf32> to vector<16x32xf32>
    %300 = arith.addf %298, %299 : vector<16x32xf32>
    %301 = arith.addf %183, %300 : vector<16x32xf32>
    %cst_86 = arith.constant dense<0.000000e+00> : vector<16xf32>
    %302 = vector.multi_reduction <add>, %301, %cst_86 [1] : vector<16x32xf32> to vector<16xf32>
    %303 = vector.shape_cast %302 : vector<16xf32> to vector<16x1xf32>
    %cst_87 = arith.constant 3.200000e+01 : f32
    %304 = vector.broadcast %cst_87 : f32 to vector<16x1xf32>
    %305 = arith.divf %303, %304 : vector<16x1xf32>
    %306 = vector.broadcast %305 : vector<16x1xf32> to vector<16x32xf32>
    %307 = arith.subf %301, %306 : vector<16x32xf32>
    %308 = arith.mulf %307, %307 : vector<16x32xf32>
    %cst_88 = arith.constant dense<0.000000e+00> : vector<16xf32>
    %309 = vector.multi_reduction <add>, %308, %cst_88 [1] : vector<16x32xf32> to vector<16xf32>
    %310 = vector.shape_cast %309 : vector<16xf32> to vector<16x1xf32>
    %cst_89 = arith.constant 3.200000e+01 : f32
    %311 = vector.broadcast %cst_89 : f32 to vector<16x1xf32>
    %312 = arith.divf %310, %311 : vector<16x1xf32>
    %313 = vector.broadcast %305 : vector<16x1xf32> to vector<16x32xf32>
    %314 = arith.subf %301, %313 : vector<16x32xf32>
    %cst_90 = arith.constant 9.99999974E-6 : f32
    %315 = vector.broadcast %cst_90 : f32 to vector<16x1xf32>
    %316 = arith.addf %312, %315 : vector<16x1xf32>
    %317 = math.rsqrt %316 : vector<16x1xf32>
    %318 = vector.broadcast %317 : vector<16x1xf32> to vector<16x32xf32>
    %319 = arith.mulf %314, %318 : vector<16x32xf32>
    %320 = vector.broadcast %188 : vector<1x32xf32> to vector<16x32xf32>
    %321 = arith.mulf %319, %320 : vector<16x32xf32>
    %322 = vector.broadcast %189 : vector<1x32xf32> to vector<16x32xf32>
    %323 = arith.addf %321, %322 : vector<16x32xf32>
    %324 = vector.shape_cast %323 : vector<16x32xf32> to vector<2x8x32xf32>
    %325 = vector.extract_strided_slice %324 {offsets = [0, 0, 0], sizes = [2, 1, 32], strides = [1, 1, 1]} : vector<2x8x32xf32> to vector<2x1x32xf32>
    %326 = vector.shape_cast %325 : vector<2x1x32xf32> to vector<2x32xf32>
    %c1_91 = arith.constant 1 : index
    %c0_92 = arith.constant 0 : index
    %c0_93 = arith.constant 0 : index
    %327 = vector.load %arg6[%c1_91, %c0_92, %c0_93] : memref<2x32x64xbf16, #tpu.memory_space<vmem>>, vector<1x32x64xbf16>
    %328 = vector.shape_cast %327 : vector<1x32x64xbf16> to vector<32x64xbf16>
    %329 = arith.truncf %326 : vector<2x32xf32> to vector<2x32xbf16>
    %cst_94 = arith.constant dense<0.000000e+00> : vector<2x64xf32>
    %330 = tpu.matmul %329, %328, %cst_94 {dimension_numbers = #tpu.dot_dimension_numbers<[1], [0], [0], [1], [0, 0, 1, 1], [], []>} : vector<2x32xbf16>, vector<32x64xbf16>, vector<2x64xf32> -> vector<2x64xf32>
    %331 = vector.broadcast %190 : vector<1x64xf32> to vector<2x64xf32>
    %332 = arith.addf %330, %331 : vector<2x64xf32>
    %cst_95 = arith.constant 0.000000e+00 : f32
    %333 = vector.broadcast %cst_95 : f32 to vector<2x64xf32>
    %334 = arith.maximumf %332, %333 : vector<2x64xf32>
    %c1_96 = arith.constant 1 : index
    %c0_97 = arith.constant 0 : index
    %c0_98 = arith.constant 0 : index
    %335 = vector.load %arg7[%c1_96, %c0_97, %c0_98] : memref<2x64x32xbf16, #tpu.memory_space<vmem>>, vector<1x64x32xbf16>
    %336 = vector.shape_cast %335 : vector<1x64x32xbf16> to vector<64x32xbf16>
    %337 = arith.truncf %334 : vector<2x64xf32> to vector<2x64xbf16>
    %cst_99 = arith.constant dense<0.000000e+00> : vector<2x32xf32>
    %338 = tpu.matmul %337, %336, %cst_99 {dimension_numbers = #tpu.dot_dimension_numbers<[1], [0], [0], [1], [0, 0, 1, 1], [], []>} : vector<2x64xbf16>, vector<64x32xbf16>, vector<2x32xf32> -> vector<2x32xf32>
    %339 = vector.broadcast %191 : vector<1x32xf32> to vector<2x32xf32>
    %340 = arith.addf %338, %339 : vector<2x32xf32>
    %341 = arith.addf %326, %340 : vector<2x32xf32>
    %cst_100 = arith.constant dense<0.000000e+00> : vector<2xf32>
    %342 = vector.multi_reduction <add>, %341, %cst_100 [1] : vector<2x32xf32> to vector<2xf32>
    %343 = vector.shape_cast %342 : vector<2xf32> to vector<2x1xf32>
    %cst_101 = arith.constant 3.200000e+01 : f32
    %344 = vector.broadcast %cst_101 : f32 to vector<2x1xf32>
    %345 = arith.divf %343, %344 : vector<2x1xf32>
    %346 = vector.broadcast %345 : vector<2x1xf32> to vector<2x32xf32>
    %347 = arith.subf %341, %346 : vector<2x32xf32>
    %348 = arith.mulf %347, %347 : vector<2x32xf32>
    %cst_102 = arith.constant dense<0.000000e+00> : vector<2xf32>
    %349 = vector.multi_reduction <add>, %348, %cst_102 [1] : vector<2x32xf32> to vector<2xf32>
    %350 = vector.shape_cast %349 : vector<2xf32> to vector<2x1xf32>
    %cst_103 = arith.constant 3.200000e+01 : f32
    %351 = vector.broadcast %cst_103 : f32 to vector<2x1xf32>
    %352 = arith.divf %350, %351 : vector<2x1xf32>
    %353 = vector.broadcast %345 : vector<2x1xf32> to vector<2x32xf32>
    %354 = arith.subf %341, %353 : vector<2x32xf32>
    %cst_104 = arith.constant 9.99999974E-6 : f32
    %355 = vector.broadcast %cst_104 : f32 to vector<2x1xf32>
    %356 = arith.addf %352, %355 : vector<2x1xf32>
    %357 = math.rsqrt %356 : vector<2x1xf32>
    %358 = vector.broadcast %357 : vector<2x1xf32> to vector<2x32xf32>
    %359 = arith.mulf %354, %358 : vector<2x32xf32>
    %360 = vector.broadcast %192 : vector<1x32xf32> to vector<2x32xf32>
    %361 = arith.mulf %359, %360 : vector<2x32xf32>
    %362 = vector.broadcast %193 : vector<1x32xf32> to vector<2x32xf32>
    %363 = arith.addf %361, %362 : vector<2x32xf32>
    %c0_105 = arith.constant 0 : index
    %c0_106 = arith.constant 0 : index
    %364 = vector.load %arg9[%c0_105, %c0_106] : memref<32x16xbf16, #tpu.memory_space<vmem>>, vector<32x16xbf16>
    %365 = arith.truncf %363 : vector<2x32xf32> to vector<2x32xbf16>
    %cst_107 = arith.constant dense<0.000000e+00> : vector<2x16xf32>
    %366 = tpu.matmul %365, %364, %cst_107 {dimension_numbers = #tpu.dot_dimension_numbers<[1], [0], [0], [1], [0, 0, 1, 1], [], []>} : vector<2x32xbf16>, vector<32x16xbf16>, vector<2x16xf32> -> vector<2x16xf32>
    %c0_108 = arith.constant 0 : index
    %c0_109 = arith.constant 0 : index
    %367 = vector.load %arg10[%c0_108, %c0_109] : memref<1x16xf32, #tpu.memory_space<vmem>>, vector<1x16xf32>
    %368 = vector.broadcast %367 : vector<1x16xf32> to vector<2x16xf32>
    %369 = arith.addf %366, %368 : vector<2x16xf32>
    %cst_110 = arith.constant dense<0xFF800000> : vector<2xf32>
    %370 = vector.multi_reduction <maximumf>, %369, %cst_110 [1] : vector<2x16xf32> to vector<2xf32>
    %371 = vector.shape_cast %370 : vector<2xf32> to vector<2x1xf32>
    %372 = vector.broadcast %371 : vector<2x1xf32> to vector<2x16xf32>
    %373 = arith.subf %369, %372 : vector<2x16xf32>
    %374 = math.exp %373 : vector<2x16xf32>
    %cst_111 = arith.constant dense<0.000000e+00> : vector<2xf32>
    %375 = vector.multi_reduction <add>, %374, %cst_111 [1] : vector<2x16xf32> to vector<2xf32>
    %376 = vector.shape_cast %375 : vector<2xf32> to vector<2x1xf32>
    %377 = math.log %376 : vector<2x1xf32>
    %378 = vector.broadcast %377 : vector<2x1xf32> to vector<2x16xf32>
    %379 = arith.subf %373, %378 : vector<2x16xf32>
    %c0_112 = arith.constant 0 : index
    %c0_113 = arith.constant 0 : index
    %c0_114 = arith.constant 0 : index
    %380 = vector.load %arg11[%c0_112, %c0_113, %c0_114] : memref<1x2x16xf32, #tpu.memory_space<vmem>>, vector<1x2x16xf32>
    %381 = vector.shape_cast %380 : vector<1x2x16xf32> to vector<2x16xf32>
    %382 = vector.shape_cast %379 : vector<2x16xf32> to vector<1x2x16xf32>
    tpu.vector_store %arg11[%c0_112, %c0_113, %c0_114], %382 {strides = array<i32>} : memref<1x2x16xf32, #tpu.memory_space<vmem>>, vector<1x2x16xf32>,
    return
  }
  func.func @transform_0(%arg0: i32) -> (i32, i32, i32) {
    %c0_i32 = arith.constant 0 : i32
    %c0_i32_0 = arith.constant 0 : i32
    %c0_i32_1 = arith.constant 0 : i32
    return %arg0, %c0_i32, %c0_i32_0 : i32, i32, i32
  }
  func.func @transform_1(%arg0: i32) -> (i32, i32) {
    %c0_i32 = arith.constant 0 : i32
    %c0_i32_0 = arith.constant 0 : i32
    %c0_i32_1 = arith.constant 0 : i32
    return %c0_i32, %c0_i32_0 : i32, i32
  }
  func.func @transform_2(%arg0: i32) -> (i32, i32, i32) {
    %c0_i32 = arith.constant 0 : i32
    %c0_i32_0 = arith.constant 0 : i32
    %c0_i32_1 = arith.constant 0 : i32
    return %arg0, %c0_i32, %c0_i32_0 : i32, i32, i32
  }
  func.func @transform_3(%arg0: i32) -> (i32, i32, i32) {
    %c0_i32 = arith.constant 0 : i32
    %c0_i32_0 = arith.constant 0 : i32
    %c0_i32_1 = arith.constant 0 : i32
    %c0_i32_2 = arith.constant 0 : i32
    return %c0_i32, %c0_i32_0, %c0_i32_1 : i32, i32, i32
  }
  func.func @transform_4(%arg0: i32) -> (i32, i32, i32) {
    %c0_i32 = arith.constant 0 : i32
    %c0_i32_0 = arith.constant 0 : i32
    %c0_i32_1 = arith.constant 0 : i32
    %c0_i32_2 = arith.constant 0 : i32
    return %c0_i32, %c0_i32_0, %c0_i32_1 : i32, i32, i32
  }
  func.func @transform_5(%arg0: i32) -> (i32, i32, i32) {
    %c0_i32 = arith.constant 0 : i32
    %c0_i32_0 = arith.constant 0 : i32
    %c0_i32_1 = arith.constant 0 : i32
    %c0_i32_2 = arith.constant 0 : i32
    return %c0_i32, %c0_i32_0, %c0_i32_1 : i32, i32, i32
  }
  func.func @transform_6(%arg0: i32) -> (i32, i32, i32) {
    %c0_i32 = arith.constant 0 : i32
    %c0_i32_0 = arith.constant 0 : i32
    %c0_i32_1 = arith.constant 0 : i32
    %c0_i32_2 = arith.constant 0 : i32
    return %c0_i32, %c0_i32_0, %c0_i32_1 : i32, i32, i32
  }
  func.func @transform_7(%arg0: i32) -> (i32, i32, i32) {
    %c0_i32 = arith.constant 0 : i32
    %c0_i32_0 = arith.constant 0 : i32
    %c0_i32_1 = arith.constant 0 : i32
    %c0_i32_2 = arith.constant 0 : i32
    return %c0_i32, %c0_i32_0, %c0_i32_1 : i32, i32, i32
  }
  func.func @transform_8(%arg0: i32) -> (i32, i32) {
    %c0_i32 = arith.constant 0 : i32
    %c0_i32_0 = arith.constant 0 : i32
    %c0_i32_1 = arith.constant 0 : i32
    return %c0_i32, %c0_i32_0 : i32, i32
  }
  func.func @transform_9(%arg0: i32) -> (i32, i32) {
    %c0_i32 = arith.constant 0 : i32
    %c0_i32_0 = arith.constant 0 : i32
    %c0_i32_1 = arith.constant 0 : i32
    return %c0_i32, %c0_i32_0 : i32, i32
  }
  func.func @transform_10(%arg0: i32) -> (i32, i32, i32) {
    %c0_i32 = arith.constant 0 : i32
    %c0_i32_0 = arith.constant 0 : i32
    %c0_i32_1 = arith.constant 0 : i32
    return %arg0, %c0_i32, %c0_i32_0 : i32, i32, i32
  }
}

</mosaic_0001>

<bundles_post_ra>
// kernel: tpu_custom_call.1
= control target key start
LH: loop header
LB: loop body
LE: loop exit
PB: predicated region body
PF: predicated region fallthrough
CT: control target
= control target key end

     0   :  { %s3314_s0 = inlined_call_operand.vmem [shape: f32[4,8,32], index: 0, kind: input, shape index: {}]   ;;  %s3315_s1 = inlined_call_operand.vmem [shape: f32[8,32], index: 1, kind: input, shape index: {}]   ;;  %s3316_s2 = inlined_call_operand.hbm [shape: f32[4,1,8], index: 2, kind: input, shape index: {}]   ;;  %s3317_s3 = inlined_call_operand.vmem [shape: bf16[2,32,96], index: 3, kind: input, shape index: {}]   ;;  %s3318_s4 = inlined_call_operand.vmem [shape: bf16[2,32,32], index: 4, kind: input, shape index: {}]   ;;  %s3319_s5 = inlined_call_operand.hbm [shape: bf16[2,32,64], index: 5, kind: input, shape index: {}]   ;;  %s3320_s6 = inlined_call_operand.vmem [shape: bf16[2,64,32], index: 6, kind: input, shape index: {}]   ;;  %s3321_s7 = inlined_call_operand.vmem [shape: f32[2,8,96], index: 7, kind: input, shape index: {}]   ;;  %s3322_s8 = inlined_call_operand.vmem [shape: bf16[32,16], index: 8, kind: input, shape index: {}]   ;;  %s3323_s9 = inlined_call_operand.vmem [shape: f32[1,16], index: 9, kind: input, shape index: {}]   ;;  %s3324_s10 = inlined_call_operand.hbm [shape: f32[2,2,16], index: 10, kind: output, shape index: {}]  }
   0x1   :  { %3342 = sst [smem:[#allocation14_spill]] %s3319_s5 }
   0x2   :  { %15 = vsyncpa [#allocation3], 0 }
   0x3   :  { %17 = vsyncpa [#allocation3 + $0x1], 0 }
   0x4   :  { %18 = vsyncpa [#allocation6], 0 }
   0x5   :  { %19 = vsyncpa [#allocation4], 0 }
   0x6   :  { %21 = vsyncpa [#allocation4 + $0x1], 0  ;;  %s2734_s13 = smov 0   ;;  %s2736_s14 = smov 0  }
   0x7   :  { %s2738_s15 = smov 0   ;;  %s2740_s16 = smov 0  }
   0x8 LB: > { %3343 = sst [smem:[#allocation11_spill]] %s2653_s15  ;;  %s2755_s17 = sadd.s32 4294967295, %s2657_s16   ;;  %s2657_s16 = sphi %s2740_s16, %s3362_s16   ;;  %s2653_s15 = sphi %s2738_s15, %s3364_s15   ;;  %s2649_s14 = sphi %s2736_s14, %s3366_s14   ;;  %s2645_s13 = sphi %s2734_s13, %s3365_s13  }
   0x9   : > { %s2150_s18 = sadd.s32 4294967294, %s2657_s16   ;;  %p94_p0 = scmp.ne.s32.totalorder %s2649_s14, %s2645_s13 }
   0xa   : > { %p95_p1 = scmp.eq.s32.totalorder %s2755_s17, 0  ;;  %p265_p2 = scmp.eq.s32.totalorder %s2755_s17, 1 }
   0xb   : > { %p271_p3 = scmp.eq.s32.totalorder %s2150_s18, 1  ;;  %p2151_p5 = scmp.ge.s32.totalorder %s2657_s16, 1 }
   0xc   : > { %p2764_p4 = por %p95_p1, %p94_p0  ;;  %p278_p7 = scmp.lt.s32.totalorder %s2657_s16, 3 }
   0xd   : > { %p2769_p6 = por %p271_p3, %p94_p0  ;;  %s3346_s5 = sld [smem:[#allocation14_spill]] }
   0xe   : > { %p2777_p8 = pnand %p2151_p5, %p278_p7  ;;  %s2659_s25 = smov [#allocation5]  }
   0xf   : > { %s300_s26 = sshll.u32 %s2659_s25, 4  ;;  %s2787_s27 = sadd.s32 1, %s2657_s16   ;;  %s301_s26 = int_to_ptr.vmem [resolvable:$true] %s300_s26 }
  0x10   : > { %p2342_p9 = pneg %p2777_p8  ;;  %3348 = sst [smem:[#allocation12_spill]] %s2787_s27 }
  0x11   : > { %s2660_s28 = smov 64   ;;  %s2661_s29 = smov 4  }
  0x12   : > { %p2343_p10 = pnand %p2342_p9, %p95_p1  ;;  %s78_s30 = ssub.s32 %s2657_s16, %s2787_s27 }
  0x13   : > { %s298_s23 = sshll.u32 %s3346_s5, 4  ;;  %s81_s11 = sadd.s32 1, %s2653_s15  ;;  %s299_s23 = int_to_ptr.hbm [resolvable:$true] %s298_s23 }
  0x14   : > { %2345 = dma.hbm_to_vmem [thread:$0]  (!%p2343_p10), %s299_s23, 512, %s301_s26, [#allocation6], %s2660_s28, %s2660_s28, %s2661_s29  }
  0x15   : > { %p79_p12 = scmp.eq.s32.totalorder %s78_s30, 0  ;;  %p88_p13 = scmp.ne.s32.totalorder %s2653_s15, %s2649_s14 }
  0x16   : > { %p89_p0 = scmp.eq.s32.totalorder %s2657_s16, 0  ;;  %p2355_p3 = scmp.lt.s32.totalorder %s2657_s16, 2 }
  0x17   : > { %s2797_s12 = scalar_select %p79_p12, %s2653_s15, %s81_s11  }
  0x18   : > { %p90_p5 = por %p89_p0, %p88_p13  ;;  %p2801_p7 = por %p265_p2, %p88_p13 }
  0x19   : > { %3349 = sst [smem:[#allocation13_spill]] %s2797_s12  ;;  %s335_s21 = sand.u32 1, %s2653_s15  }
  0x1a   : > { %s2155_s22 = sshll.u32 %s2657_s16, 1  ;;  %s2154_s25 = sshll.u32 %s335_s21, 1 }
  0x1b   : > { %s343_s26 = scalar_lea.hbm %s3316_s2, %s2155_s22  ;;  %s339_s29 = scalar_lea.vmem [#allocation2], %s2154_s25 }
  0x1c   : > { %s344_s28 = sshll.u32 %s343_s26, 4  ;;  %s346_s30 = sshll.u32 %s339_s29, 4  ;;  %s345_s28 = int_to_ptr.hbm [resolvable:$true] %s344_s28  ;;  %s347_s30 = int_to_ptr.vmem [resolvable:$true] %s346_s30 }
  0x1d   : > { %p2812_p9 = pnand %p2355_p3, %p90_p5  ;;  %s336_s12 = scalar_lea.sflag [#allocation3], %s335_s21 }
  0x1e   : > { %s2557_s27 = sshra.s32 %s345_s28, 4  ;;  %s2564_s25 = scalar_lea.hbm %s3316_s2, 4  ;;  %s2558_s27 = int_to_ptr.hbm [resolvable:$true] %s2557_s27 }
  0x1f   : > { %s2559_s15 = scalar_lea.hbm %s2558_s27, 2  ;;  %p2561_p10 = pneg %p2812_p9 }
  0x20   : > { %p2560_p2 = scmp.ne.s32.totalorder %s2558_s27, %s2559_s15  ;;  %p2565_p0 = scmp.lt.s32.totalorder %s2558_s27, %s3316_s2 }
  0x21   : > { %p2566_p3 = scmp.lt.s32.totalorder %s2564_s25, %s2559_s15 }
  0x22   : > { %p2562_p12 = pnand %p2561_p10, %p2560_p2 }
  0x23   : > { %p2567_p5 = por %p2566_p3, %p2565_p0 }
  0x24   : > { %p2563_p13 = pneg %p2562_p12 }
  0x26   : > { %p2568_p11 = pnand %p2567_p5, %p2563_p13 }
  0x28   : > { %2571 = shalt.err (!%p2568_p11)
}
  0x29   : > { %s2662_s21 = smov 16   ;;  %s2663_s29 = smov 1  }
  0x2a   : > { %2349 = dma.hbm_to_vmem [thread:$0]  (!%p2812_p9), %s345_s28, 32, %s347_s30, %s336_s12, %s2662_s21, %s2662_s21, %s2663_s29  }
  0x2b   : > { %358 = sbr.rel (%p2777_p8) target bundleno = 4386 (0x1122), region = 60  ;;  %s2829_s5 = sand.u32 (!%p2777_p8), 1, %s2649_s14  }
  0x2c   : > { %s3328_s27 = sshll.u32 (!%p2777_p8), %s2829_s5, 1  ;;  %s361_s15 = scalar_lea.sflag (!%p2777_p8), [#allocation3], %s2829_s5 }
  0x2d   : > { %s2835_s22 = scalar_lea.vmem (!%p2777_p8), [#allocation2], %s3328_s27 }
  0x30   : > { %2632 = dma.done.wait (%p2764_p4), %s361_s15, 32  }
  0x31   : > { %2634 = vsyncadd (%p2764_p4), %s361_s15, 4294967264 }
  0x32   : > { %2636 = dma.done.wait (%p95_p1), [#allocation6], 512  }
  0x33   : > { %2638 = vsyncadd (%p95_p1), [#allocation6], 4294966784  ;;  %s2846_s24 = sshll.u32 %s2755_s17, 1  ;;  %v2313_v0 = vld [vmem:[%s3317_s3 + $0x8] sm:$0xff]  ;;  %v422_v3 = vld [vmem:[%s3315_s1] sm:$0xff]  ;;  %vm446_vm0 = vcmask 261120  }
  0x34   : > { %p413_p8 = scmp.lt.s32.totalorder %s2846_s24, 3  ;;  %456 = vmatpush.bf16.msra.mxu0 %v2313_v0  ;;  %v2312_v4 = vld [vmem:[%s3317_s3] sm:$0xff]  ;;  %s2665_s30 = smov 88   ;;  %vm471_vm1 = vcmask 64512   ;;  %vm554_vm2 = vcmask 1043456   ;;  %vm966_vm3 = vcmask 130048  }
  0x35   : > { %v2872_v8 = vld [vmem:[%s3321_s7] sm:$0xff]  ;;  %s2666_s11 = smov 96   ;;  %s2668_s19 = smov 80   ;;  %vm969_vm4 = vcmask 195584   ;;  %vm1137_vm12 = vcmask 523264  }
  0x36   : > { %s414_s12 = scalar_select %p413_p8, %s2846_s24, 3  ;;  %v433_v9 = vperm.slane %v2872_v8, 0  ;;  %v2924_v42 = vld [vmem:[%s2835_s22] ss:$0 sm:$0xff]  ;;  %v2931_v53 = vld [vmem:[%s2835_s22 + $0x1] ss:$0 sm:$0xff] }
  0x37   : > { %s2669_s23 = smov 72   ;;  %s3340_s26 = smov 104  }
  0x38   : > { %s2161_s28 = sshll.u32 %s414_s12, 3  ;;  %457 = vmatpush.bf16.msra.mxu0 %v2312_v4  ;;  %s3338_s22 = smov 64  }
  0x39   : > { %s416_s25 = scalar_lea.vmem %s3314_s0, %s2161_s28  ;;  %s2664_s28 = smov 120  }
  0x3a   : > { %v420_v1 = vld [vmem:[%s416_s25] sm:$0xff]  ;;  %v421_v2 = vld [vmem:[%s416_s25 + $0x8] sm:$0xff]  ;;  %s2667_s25 = smov 112   ;;  %s3334_s21 = smov 56  }
  0x3b   : > { %v2862_v5 = vadd.f32 %v422_v3, %v420_v1  ;;  %v2864_v6 = vadd.f32 %v422_v3, %v421_v2  ;;  %s3331_s17 = smov 48   ;;  %s3329_s29 = smov 40  }
  0x3c   : > { %s3333_s15 = smov 8   ;;  %s3337_s12 = smov 16  }
  0x3d   : > { %v432_v7 = vpack.c.bf16 %v2864_v6, %v2862_v5  ;;  %s3336_s27 = smov 24  }
  0x3f   : > { %2170 = vmatmul.msk.bf16.vlgmr.msra.gmra.mxu0 %vm446_vm0, %v432_v7 }
  0xbc   : > { %v459_v10 = vpop.f32.mrf.mxu0 }
  0xbd   : > { %v460_v11 = vadd.f32 %v459_v10, %v433_v9 }
  0xbf   : > { %v464_v12 = vpack.c.bf16 %v460_v11, %v460_v11 }
  0xc1   : > { %v467_v13 = vunpack.c.l.b16 %v464_v12 }
  0xc3   : > { %v2875_v14 = vpack.c.b16 %v467_v13, %v467_v13 }
  0xc4   : > { %v461_v15 = vpop.f32.mrf.mxu0 }
  0xc5   : > { %v462_v16 = vadd.f32 %v461_v15, %v433_v9  ;;  %592 = vrot.lane.b32.xlu2 %v2875_v14, %s2664_s28  ;;  %594 = vrot.lane.b32.xlu1 %v2875_v14, %s2665_s30 }
  0xc6   : > { %469 = vrot.lane.b32.xlu0 %v2875_v14, %s2666_s11 }
  0xc7   : > { %v465_v17 = vpack.c.bf16 %v462_v16, %v462_v16 }
  0xc9   : > { %v492_v18 = vunpack.c.l.b16 %v465_v17 }
  0xcb   : > { %v2883_v19 = vpack.c.b16 %v492_v18, %v492_v18 }
  0xcd   : > { %615 = vrot.lane.b32.xlu2 %v2883_v19, %s2664_s28  ;;  %617 = vrot.lane.b32.xlu1 %v2883_v19, %s2665_s30 }
  0xce   : > { %494 = vrot.lane.b32.xlu0 %v2883_v19, %s2666_s11 }
  0xd5   : > { %708 = vrot.lane.b32.xlu2 %v2875_v14, %s2667_s25  ;;  %733 = vrot.lane.b32.xlu1 %v2883_v19, %s2668_s19 }
  0xd6   : > { %710 = vrot.lane.b32.xlu0 %v2875_v14, %s2668_s19 }
  0xdd   : > { %849 = vrot.lane.b32.xlu2 %v2883_v19, %s2669_s23  ;;  %826 = vrot.lane.b32.xlu1 %v2875_v14, %s2669_s23 }
  0xde   : > { %731 = vrot.lane.b32.xlu0 %v2883_v19, %s2667_s25 }
  0xe5   : > { %847 = vrot.lane.b32.xlu1 %v2883_v19, %s3340_s26 }
  0xe6   : > { %824 = vrot.lane.b32.xlu0 %v2875_v14, %s3340_s26  ;;  %s2607_s26 = scalar_lea.hbm %s3324_s10, 4 }
 0x11f   : > { %v593_v20 = vpop.permute.xlu2 %592 }
 0x127   : > { %v616_v25 = vpop.permute.xlu2 %615 }
 0x12f   : > { %v709_v30 = vpop.permute.xlu2 %708 }
 0x137   : > { %v595_v21 = vpop.permute.xlu1 %594  ;;  %v850_v35 = vpop.permute.xlu2 %849 }
 0x138   : > { %v470_v22 = vpop.permute.xlu0 %469  ;;  %v600_v23 = vsel %vm471_vm1, %v595_v21, 0  ;;  %v855_v38 = vsel %vm471_vm1, %v850_v35, 0 }
 0x139   : > { %v476_v24 = vsel %vm471_vm1, %v470_v22, 0  ;;  %609 = vmatpush.bf16.xpose.msrb.mxu0 %v600_v23 }
 0x13a   : > { %485 = vmatpush.bf16.xpose.msra.mxu1 %v476_v24 }
 0x13f   : > { %v618_v26 = vpop.permute.xlu1 %617 }
 0x140   : > { %v495_v27 = vpop.permute.xlu0 %494  ;;  %2175 = vmatmul.msk.bf16.vlgmr.msrb.gmra.mxu0 %vm471_vm1, %v593_v20  ;;  %v623_v28 = vsel %vm471_vm1, %v618_v26, 0 }
 0x141   : > { %2171 = vmatmul.msk.bf16.vlgmr.msra.gmra.mxu1 %vm471_vm1, %v464_v12  ;;  %v500_v29 = vsel %vm471_vm1, %v495_v27, 0 }
 0x142   : > { %509 = vmatpush.bf16.xpose.msra.mxu2 %v500_v29  ;;  %632 = vmatpush.bf16.xpose.msrb.mxu1 %v623_v28 }
 0x147   : > { %v734_v31 = vpop.permute.xlu1 %733 }
 0x148   : > { %v739_v32 = vsel %vm471_vm1, %v734_v31, 0  ;;  %v711_v33 = vpop.permute.xlu0 %710 }
 0x149   : > { %v716_v34 = vsel %vm471_vm1, %v711_v33, 0  ;;  %2172 = vmatmul.msk.bf16.vlgmr.msra.gmra.mxu2 %vm471_vm1, %v465_v17 }
 0x14a   : > { %748 = vmatpush.bf16.xpose.msra.mxu1 %v739_v32  ;;  %725 = vmatpush.bf16.xpose.msra.mxu0 %v716_v34 }
 0x14f   : > { %v827_v36 = vpop.permute.xlu1 %826 }
 0x150   : > { %v832_v37 = vsel %vm471_vm1, %v827_v36, 0  ;;  %v732_v39 = vpop.permute.xlu0 %731 }
 0x151   : > { %2176 = vmatmul.msk.bf16.vlgmr.msrb.gmra.mxu1 %vm471_vm1, %v616_v25  ;;  %2179 = vmatmul.msk.bf16.vlgmr.msra.gmra.mxu0 %vm471_vm1, %v709_v30 }
 0x152   : > { %864 = vmatpush.bf16.xpose.msrb.mxu1 %v855_v38  ;;  %841 = vmatpush.bf16.xpose.msrb.mxu0 %v832_v37 }
 0x157   : > { %v848_v41 = vpop.permute.xlu1 %847 }
 0x158   : > { %v825_v40 = vpop.permute.xlu0 %824 }
 0x161   : > { %2180 = vmatmul.msk.bf16.vlgmr.msra.gmra.mxu1 %vm471_vm1, %v732_v39  ;;  %2183 = vmatmul.msk.bf16.vlgmr.msrb.gmra.mxu0 %vm471_vm1, %v825_v40 }
 0x171   : > { %2184 = vmatmul.msk.bf16.vlgmr.msrb.gmra.mxu1 %vm471_vm1, %v848_v41 }
 0x1bd   : > { %v611_v43 = vpop.f32.mrf.mxu0 }
 0x1be   : > { %v487_v44 = vpop.f32.mrf.mxu1  ;;  %v638_v45 = vmul.f32 0.35355338, %v611_v43 }
 0x1bf   : > { %v515_v46 = vmul.f32 0.35355338, %v487_v44 }
 0x1c0   : > { %v640_v47 = vadd.f32 %v2924_v42, %v638_v45 }
 0x1c1   : > { %v523_v48 = vadd.f32 %v2924_v42, %v515_v46 }
 0x1c2   : > { %v642_v49 = vsel %vm471_vm1, %v640_v47, -inf }
 0x1c3   : > { %643 = vmax.xlane.f32.xlu1 %v642_v49  ;;  %v525_v50 = vsel %vm471_vm1, %v523_v48, -inf }
 0x1c4   : > { %526 = vmax.xlane.f32.xlu2 %v525_v50 }
 0x1c5   : > { %v613_v51 = vpop.f32.mrf.mxu0 }
 0x1c6   : > { %v489_v52 = vpop.f32.mrf.mxu1 }
 0x1cc   : > { %v511_v54 = vpop.f32.mrf.mxu2 }
 0x1cd   : > { %v516_v55 = vmul.f32 0.35355338, %v511_v54 }
 0x1ce   : > { %v634_v56 = vpop.f32.mrf.mxu1  ;;  %v727_v57 = vpop.f32.mrf.mxu0 }
 0x1cf   : > { %v639_v58 = vmul.f32 0.35355338, %v634_v56  ;;  %v524_v59 = vadd.f32 %v2931_v53, %v516_v55  ;;  %v754_v16 = vmul.f32 0.35355338, %v727_v57 }
 0x1d1   : > { %v528_v60 = vsel %vm471_vm1, %v524_v59, -inf  ;;  %v641_v61 = vadd.f32 %v2931_v53, %v639_v58  ;;  %v756_v21 = vadd.f32 %v2924_v42, %v754_v16 }
 0x1d2   : > { %529 = vmax.xlane.f32.xlu0 %v528_v60 }
 0x1d3   : > { %v645_v62 = vsel %vm471_vm1, %v641_v61, -inf  ;;  %v758_v23 = vsel %vm471_vm1, %v756_v21, -inf }
 0x1d4   : > { %646 = vmax.xlane.f32.xlu2 %v645_v62  ;;  %v513_v63 = vpop.f32.mrf.mxu2 }
 0x1d6   : > { %v636_v0 = vpop.f32.mrf.mxu1  ;;  %v729_v1 = vpop.f32.mrf.mxu0 }
 0x1dc   : > { %571 = vrot.lane.b32.xlu1 %v2883_v19, %s3338_s22 }
 0x1de   : > { %v750_v2 = vpop.f32.mrf.mxu1  ;;  %v843_v3 = vpop.f32.mrf.mxu0 }
 0x1df   : > { %v755_v12 = vmul.f32 0.35355338, %v750_v2  ;;  %v870_v18 = vmul.f32 0.35355338, %v843_v3 }
 0x1e1   : > { %v757_v15 = vadd.f32 %v2931_v53, %v755_v12  ;;  %v872_v22 = vadd.f32 %v2924_v42, %v870_v18 }
 0x1e3   : > { %v761_v20 = vsel %vm471_vm1, %v757_v15, -inf  ;;  %v874_v24 = vsel %vm471_vm1, %v872_v22, -inf }
 0x1e4   : > { %687 = vrot.lane.b32.xlu1 %v2883_v19, %s3334_s21 }
 0x1e6   : > { %666 = vrot.lane.b32.xlu0 %v2875_v14, %s3334_s21  ;;  %v752_v4 = vpop.f32.mrf.mxu1  ;;  %v845_v7 = vpop.f32.mrf.mxu0 }
 0x1ec   : > { %549 = vrot.lane.b32.xlu2 %v2875_v14, %s3338_s22 }
 0x1ee   : > { %v866_v9 = vpop.f32.mrf.mxu1 }
 0x1ef   : > { %v871_v11 = vmul.f32 0.35355338, %v866_v9 }
 0x1f1   : > { %v873_v13 = vadd.f32 %v2931_v53, %v871_v11 }
 0x1f3   : > { %v877_v17 = vsel %vm471_vm1, %v873_v13, -inf }
 0x1f6   : > { %v868_v10 = vpop.f32.mrf.mxu1 }
 0x20e   : > { %878 = vmax.xlane.f32.xlu1 %v877_v17 }
 0x210   : > { %762 = vmax.xlane.f32.xlu0 %v761_v20 }
 0x215   : > { %759 = vmax.xlane.f32.xlu2 %v758_v23 }
 0x218   : > { %875 = vmax.xlane.f32.xlu0 %v874_v24 }
 0x236   : > { %v644_v25 = vpop.xlane.xlu1 %643 }
 0x237   : > { %v648_v26 = vsub.f32 %v640_v47, %v644_v25  ;;  %v527_v27 = vpop.xlane.xlu2 %526 }
 0x238   : > { %v531_v28 = vsub.f32 %v523_v48, %v527_v27 }
 0x239   : > { %v650_v29 = vmul.f32 1.442695, %v648_v26 }
 0x23a   : > { %v533_v30 = vmul.f32 1.442695, %v531_v28 }
 0x23b   : > { %2443 = vpow2.f32 %v650_v29 }
 0x23c   : > { %2445 = vpow2.f32 %v533_v30 }
 0x241   : > { %v2953_v31 = vpop.eup %2443 }
 0x242   : > { %v2955_v32 = vpop.eup %2445  ;;  %v654_v33 = vsel %vm471_vm1, %v2953_v31, 0.0 }
 0x243   : > { %v537_v34 = vsel %vm471_vm1, %v2955_v32, 0.0  ;;  %655 = vadd.xlane.f32.xlu0 %v654_v33 }
 0x244   : > { %538 = vadd.xlane.f32.xlu1 %v537_v34 }
 0x245   : > { %v530_v35 = vpop.xlane.xlu0 %529 }
 0x246   : > { %v532_v36 = vsub.f32 %v524_v59, %v530_v35 }
 0x247   : > { %v647_v37 = vpop.xlane.xlu2 %646 }
 0x248   : > { %v535_v38 = vmul.f32 1.442695, %v532_v36  ;;  %v649_v39 = vsub.f32 %v641_v61, %v647_v37 }
 0x24a   : > { %2447 = vpow2.f32 %v535_v38  ;;  %v652_v40 = vmul.f32 1.442695, %v649_v39 }
 0x24c   : > { %2449 = vpow2.f32 %v652_v40 }
 0x24e   : > { %v572_v41 = vpop.permute.xlu1 %571 }
 0x24f   : > { %v550_v43 = vpop.permute.xlu2 %549  ;;  %v577_v44 = vsel %vm554_vm2, %v572_v41, 0 }
 0x250   : > { %v2962_v45 = vpop.eup %2447  ;;  %v556_v46 = vsel %vm554_vm2, %v550_v43, 0 }
 0x251   : > { %565 = vmatpush.bf16.msra.mxu3 %v556_v46  ;;  %v540_v47 = vsel %vm471_vm1, %v2962_v45, 0.0 }
 0x252   : > { %v2967_v48 = vpop.eup %2449  ;;  %541 = vadd.xlane.f32.xlu0 %v540_v47 }
 0x253   : > { %v657_v49 = vsel %vm471_vm1, %v2967_v48, 0.0 }
 0x254   : > { %658 = vadd.xlane.f32.xlu2 %v657_v49 }
 0x255   : > { %586 = vmatpush.bf16.msrb.mxu3 %v577_v44 }
 0x256   : > { %v688_v52 = vpop.permute.xlu1 %687 }
 0x257   : > { %v693_v23 = vsel %vm554_vm2, %v688_v52, 0 }
 0x258   : > { %v667_v50 = vpop.permute.xlu0 %666 }
 0x259   : > { %v672_v51 = vsel %vm554_vm2, %v667_v50, 0 }
 0x25a   : > { %681 = vmatpush.bf16.msrb.mxu2 %v672_v51 }
 0x25d   : > { %803 = vrot.lane.b32.xlu1 %v2883_v19, %s3331_s17 }
 0x26c   : > { %782 = vrot.lane.b32.xlu2 %v2875_v14, %s3331_s17 }
 0x281   : > { %v879_v54 = vpop.xlane.xlu1 %878 }
 0x282   : > { %v881_v55 = vsub.f32 %v873_v13, %v879_v54 }
 0x283   : > { %v763_v56 = vpop.xlane.xlu0 %762 }
 0x284   : > { %v765_v57 = vsub.f32 %v757_v15, %v763_v56  ;;  %v884_v59 = vmul.f32 1.442695, %v881_v55 }
 0x286   : > { %v768_v58 = vmul.f32 1.442695, %v765_v57 }
 0x288   : > { %2451 = vpow2.f32 %v768_v58  ;;  %v760_v60 = vpop.xlane.xlu2 %759 }
 0x289   : > { %v764_v61 = vsub.f32 %v756_v21, %v760_v60  ;;  %2453 = vpow2.f32 %v884_v59 }
 0x28b   : > { %v766_v62 = vmul.f32 1.442695, %v764_v61  ;;  %v876_v63 = vpop.xlane.xlu0 %875 }
 0x28c   : > { %v880_v0 = vsub.f32 %v872_v22, %v876_v63 }
 0x28d   : > { %2455 = vpow2.f32 %v766_v62 }
 0x28e   : > { %v2452_v1 = vpop.eup %2451  ;;  %v882_v2 = vmul.f32 1.442695, %v880_v0 }
 0x28f   : > { %v773_v3 = vsel %vm471_vm1, %v2452_v1, 0.0  ;;  %v2977_v4 = vpop.eup %2453 }
 0x290   : > { %2457 = vpow2.f32 %v882_v2  ;;  %774 = vadd.xlane.f32.xlu0 %v773_v3  ;;  %v889_v10 = vsel %vm471_vm1, %v2977_v4, 0.0 }
 0x293   : > { %v2456_v7 = vpop.eup %2455 }
 0x294   : > { %v770_v9 = vsel %vm471_vm1, %v2456_v7, 0.0 }
 0x295   : > { %771 = vadd.xlane.f32.xlu1 %v770_v9  ;;  %890 = vadd.xlane.f32.xlu2 %v889_v10 }
 0x296   : > { %v2458_v11 = vpop.eup %2457 }
 0x297   : > { %v886_v12 = vsel %vm471_vm1, %v2458_v11, 0.0 }
 0x298   : > { %887 = vadd.xlane.f32.xlu0 %v886_v12 }
 0x2ac   : > { %898 = vrot.lane.b32.xlu0 %v2875_v14, %s3329_s29 }
 0x2ae   : > { %919 = vrot.lane.b32.xlu1 %v2883_v19, %s3329_s29  ;;  %s3358_s29 = smov 16  }
 0x2b6   : > { %v656_v13 = vpop.xlane.xlu0 %655 }
 0x2b7   : > { %v539_v15 = vpop.xlane.xlu1 %538  ;;  %2459 = vrcp.f32 %v656_v13 }
 0x2b8   : > { %2461 = vrcp.f32 %v539_v15  ;;  %v2315_v15 = vld [vmem:[%s3318_s4 + $0x8] sm:$0xff] }
 0x2b9   : > { %999 = vmatpush.bf16.msra.mxu0 %v2315_v15 }
 0x2bd   : > { %v2460_v16 = vpop.eup %2459 }
 0x2be   : > { %v2462_v17 = vpop.eup %2461  ;;  %v662_v18 = vmul.f32 %v2460_v16, %v2953_v31  ;;  %v2314_v16 = vld [vmem:[%s3318_s4] sm:$0xff] }
 0x2bf   : > { %v545_v20 = vmul.f32 %v2462_v17, %v2955_v32  ;;  %1000 = vmatpush.bf16.msra.mxu0 %v2314_v16 }
 0x2c0   : > { %v664_v21 = vpack.c.bf16 %v662_v18, %v662_v18 }
 0x2c1   : > { %v547_v22 = vpack.c.bf16 %v545_v20, %v545_v20 }
 0x2c2   : > { %2177 = vmatmul.msk.bf16.vlgmr.msrb.gmra.mxu2 %vm471_vm1, %v664_v21 }
 0x2c3   : > { %2173 = vmatmul.msk.bf16.vlgmr.msra.gmra.mxu3 %vm471_vm1, %v547_v22 }
 0x2c4   : > { %702 = vmatpush.bf16.msra.mxu3 %v693_v23 }
 0x2c5   : > { %v542_v14 = vpop.xlane.xlu0 %541 }
 0x2c6   : > { %2463 = vrcp.f32 %v542_v14 }
 0x2c7   : > { %v659_v19 = vpop.xlane.xlu2 %658 }
 0x2c8   : > { %2465 = vrcp.f32 %v659_v19 }
 0x2cc   : > { %v2464_v24 = vpop.eup %2463 }
 0x2cd   : > { %v546_v25 = vmul.f32 %v2464_v24, %v2962_v45 }
 0x2ce   : > { %v2466_v31 = vpop.eup %2465 }
 0x2cf   : > { %v783_v26 = vpop.permute.xlu2 %782  ;;  %v804_v28 = vpop.permute.xlu1 %803  ;;  %v548_v29 = vpack.c.bf16 %v546_v25, %v546_v25  ;;  %v663_v32 = vmul.f32 %v2466_v31, %v2967_v48 }
 0x2d0   : > { %v788_v27 = vsel %vm554_vm2, %v783_v26, 0  ;;  %v809_v30 = vsel %vm554_vm2, %v804_v28, 0 }
 0x2d1   : > { %797 = vmatpush.bf16.msra.mxu2 %v788_v27  ;;  %v665_v33 = vpack.c.bf16 %v663_v32, %v663_v32  ;;  %v977_v32 = vperm.slane %v2872_v8, 1 }
 0x2d3   : > { %2174 = vmatmul.msk.bf16.vlgmr.msrb.gmra.mxu3 %vm471_vm1, %v548_v29 }
 0x2d4   : > { %818 = vmatpush.bf16.msrb.mxu3 %v809_v30 }
 0x2e3   : > { %2178 = vmatmul.msk.bf16.vlgmr.msra.gmra.mxu3 %vm471_vm1, %v665_v33 }
 0x303   : > { %v775_v34 = vpop.xlane.xlu0 %774 }
 0x304   : > { %2467 = vrcp.f32 %v775_v34 }
 0x308   : > { %v772_v35 = vpop.xlane.xlu1 %771  ;;  %v891_v41 = vpop.xlane.xlu2 %890 }
 0x309   : > { %2469 = vrcp.f32 %v772_v35 }
 0x30a   : > { %v2468_v36 = vpop.eup %2467  ;;  %2471 = vrcp.f32 %v891_v41  ;;  %v2678_v41 = vmov 32.0  }
 0x30b   : > { %v779_v37 = vmul.f32 %v2468_v36, %v2452_v1  ;;  %v888_v44 = vpop.xlane.xlu0 %887 }
 0x30c   : > { %2473 = vrcp.f32 %v888_v44 }
 0x30d   : > { %v781_v38 = vpack.c.bf16 %v779_v37, %v779_v37  ;;  %2475 = vrcp.f32 %v2678_v41 }
 0x30f   : > { %2182 = vmatmul.msk.bf16.vlgmr.msrb.gmra.mxu3 %vm471_vm1, %v781_v38  ;;  %v2470_v39 = vpop.eup %2469 }
 0x310   : > { %v778_v40 = vmul.f32 %v2470_v39, %v2456_v7  ;;  %v2472_v45 = vpop.eup %2471 }
 0x311   : > { %v895_v48 = vmul.f32 %v2472_v45, %v2977_v4 }
 0x312   : > { %v780_v43 = vpack.c.bf16 %v778_v40, %v778_v40  ;;  %v2474_v46 = vpop.eup %2473 }
 0x313   : > { %v894_v49 = vmul.f32 %v2474_v46, %v2458_v11  ;;  %v897_v54 = vpack.c.bf16 %v895_v48, %v895_v48 }
 0x314   : > { %2181 = vmatmul.msk.bf16.vlgmr.msra.gmra.mxu2 %vm471_vm1, %v780_v43  ;;  %v2476_v43 = vpop.eup %2475 }
 0x315   : > { %v896_v55 = vpack.c.bf16 %v894_v49, %v894_v49  ;;  %v1016_v44 = vmul.f32 32.0, %v2476_v43  ;;  %vm1020_vm5 = vweird.f32 %v2476_v43 }
 0x317   : > { %v1017_v45 = vsub.f32 1.0, %v1016_v44 }
 0x319   : > { %v1018_v46 = vmul.f32 %v2476_v43, %v1017_v45 }
 0x31e   : > { %v899_v47 = vpop.permute.xlu0 %898 }
 0x31f   : > { %v904_v50 = vsel %vm554_vm2, %v899_v47, 0  ;;  %v1019_v47 = vadd.f32 %v2476_v43, %v1018_v46 }
 0x320   : > { %v920_v51 = vpop.permute.xlu1 %919  ;;  %913 = vmatpush.bf16.msrb.mxu2 %v904_v50 }
 0x321   : > { %v925_v52 = vsel %vm554_vm2, %v920_v51, 0  ;;  %v3026_v48 = vsel %vm1020_vm5, %v2476_v43, %v1019_v47 }
 0x322   : > { %934 = vmatpush.bf16.msra.mxu3 %v925_v52 }
 0x324   : > { %2185 = vmatmul.msk.bf16.vlgmr.msrb.gmra.mxu2 %vm471_vm1, %v896_v55 }
 0x325   : > { %2186 = vmatmul.msk.bf16.vlgmr.msra.gmra.mxu3 %vm471_vm1, %v897_v54 }
 0x345   : > { %v683_v56 = vpop.f32.mrf.mxu2 }
 0x346   : > { %v567_v57 = vpop.f32.mrf.mxu3 }
 0x34d   : > { %v685_v58 = vpop.f32.mrf.mxu2 }
 0x34e   : > { %v569_v59 = vpop.f32.mrf.mxu3  ;;  %v2317_v58 = vld [vmem:[#allocation5 + $0x8] sm:$0xff] }
 0x34f   : > { %1093 = vmatpush.bf16.msra.mxu1 %v2317_v58 }
 0x356   : > { %v588_v60 = vpop.f32.mrf.mxu3 }
 0x35e   : > { %v590_v61 = vpop.f32.mrf.mxu3 }
 0x366   : > { %v704_v62 = vpop.f32.mrf.mxu3 }
 0x367   : > { %v2410_v63 = vpack.i.bf16 %v704_v62, %v683_v56  ;;  %v2316_v62 = vld [vmem:[#allocation5] sm:$0xff] }
 0x368   : > { %1094 = vmatpush.bf16.msra.mxu1 %v2316_v62 }
 0x369   : > { %2411 = vrot.lane.b32.xlu0 %v2410_v63, %s3333_s15  ;;  %s3359_s15 = smov 24  }
 0x36e   : > { %v706_v0 = vpop.f32.mrf.mxu3 }
 0x392   : > { %v820_v1 = vpop.f32.mrf.mxu3 }
 0x397   : > { %v799_v2 = vpop.f32.mrf.mxu2 }
 0x398   : > { %v2415_v3 = vpack.i.bf16 %v820_v1, %v799_v2 }
 0x39a   : > { %v822_v4 = vpop.f32.mrf.mxu3  ;;  %2416 = vrot.lane.b32.xlu1 %v2415_v3, %s3337_s12 }
 0x39f   : > { %v801_v7 = vpop.f32.mrf.mxu2 }
 0x3a7   : > { %v915_v9 = vpop.f32.mrf.mxu2 }
 0x3a8   : > { %v936_v10 = vpop.f32.mrf.mxu3 }
 0x3a9   : > { %v2420_v11 = vpack.i.bf16 %v936_v10, %v915_v9 }
 0x3ab   : > { %2421 = vrot.lane.b32.xlu0 %v2420_v11, %s3336_s27 }
 0x3af   : > { %v917_v12 = vpop.f32.mrf.mxu2 }
 0x3b0   : > { %v938_v13 = vpop.f32.mrf.mxu3 }
 0x3db   : > { %v2412_v17 = vpop.permute.xlu0 %2411 }
 0x3dc   : > { %v2414_v20 = vunpack.i.h.bf16 %v2412_v17  ;;  %v2413_v21 = vunpack.i.l.bf16 %v2412_v17 }
 0x3de   : > { %v965_v19 = vsel %vm471_vm1, %v588_v60, %v2414_v20  ;;  %v964_v24 = vsel %vm471_vm1, %v567_v57, %v2413_v21 }
 0x40c   : > { %v2417_v18 = vpop.permute.xlu1 %2416 }
 0x40d   : > { %v2419_v22 = vunpack.i.h.bf16 %v2417_v18  ;;  %v2418_v23 = vunpack.i.l.bf16 %v2417_v18  ;;  %v1060_v18 = vperm.slane %v2872_v8, 2 }
 0x40f   : > { %v967_v27 = vsel %vm966_vm3, %v964_v24, %v2418_v23  ;;  %v968_v28 = vsel %vm966_vm3, %v965_v19, %v2419_v22  ;;  %v1063_v23 = vperm.slane %v2872_v8, 3 }
 0x41d   : > { %v2422_v14 = vpop.permute.xlu0 %2421 }
 0x41e   : > { %v2424_v25 = vunpack.i.h.bf16 %v2422_v14  ;;  %v2423_v26 = vunpack.i.l.bf16 %v2422_v14 }
 0x420   : > { %v970_v29 = vsel %vm969_vm4, %v967_v27, %v2423_v26  ;;  %v971_v30 = vsel %vm969_vm4, %v968_v28, %v2424_v25  ;;  %v2321_v28 = vld [vmem:[%s3320_s6 + $0x18] sm:$0xff] }
 0x421   : > { %v976_v31 = vpack.c.bf16 %v971_v30, %v970_v29  ;;  %1145 = vmatpush.bf16.msra.mxu2 %v2321_v28  ;;  %v2320_v29 = vld [vmem:[%s3320_s6 + $0x10] sm:$0xff]  ;;  %v2319_v30 = vld [vmem:[%s3320_s6 + $0x8] sm:$0xff] }
 0x423   : > { %2195 = vmatmul.msk.bf16.vlgmr.msra.gmra.mxu0 %vm446_vm0, %v976_v31  ;;  %v2318_v31 = vld [vmem:[%s3320_s6] sm:$0xff] }
 0x425   : > { %1146 = vmatpush.bf16.msra.mxu2 %v2320_v29 }
 0x429   : > { %1147 = vmatpush.bf16.msra.mxu2 %v2319_v30  ;;  %v3078_v30 = vld [vmem:[%s3321_s7 + $0x8] sm:$0xff] }
 0x42d   : > { %1148 = vmatpush.bf16.msra.mxu2 %v2318_v31  ;;  %v1215_v31 = vperm.slane %v3078_v30, 0 }
 0x4a0   : > { %v1002_v33 = vpop.f32.mrf.mxu0 }
 0x4a1   : > { %v1003_v34 = vadd.f32 %v1002_v33, %v977_v32  ;;  %v1071_v33 = vperm.slane %v2872_v8, 4 }
 0x4a3   : > { %v1007_v35 = vadd.f32 %v1003_v34, %v2862_v5 }
 0x4a5   : > { %v1009_v36 = vsel %vm446_vm0, %v1007_v35, 0.0 }
 0x4a6   : > { %1010 = vadd.xlane.f32.xlu1 %v1009_v36 }
 0x4a8   : > { %v1004_v37 = vpop.f32.mrf.mxu0 }
 0x4a9   : > { %v1005_v38 = vadd.f32 %v1004_v37, %v977_v32 }
 0x4ab   : > { %v1008_v39 = vadd.f32 %v1005_v38, %v2864_v6 }
 0x4ad   : > { %v1012_v40 = vsel %vm446_vm0, %v1008_v39, 0.0 }
 0x4ae   : > { %1013 = vadd.xlane.f32.xlu2 %v1012_v40  ;;  %v1112_v40 = vperm.slane %v2872_v8, 5 }
 0x519   : > { %v1011_v5 = vpop.xlane.xlu1 %1010 }
 0x51a   : > { %v1022_v49 = vmul.f32 %v3026_v48, %v1011_v5 }
 0x51c   : > { %v1024_v50 = vsub.f32 %v1007_v35, %v1022_v49 }
 0x51e   : > { %v1026_v51 = vmul.f32 %v1024_v50, %v1024_v50 }
 0x520   : > { %v1028_v6 = vsel %vm446_vm0, %v1026_v51, 0.0 }
 0x521   : > { %v1014_v52 = vpop.xlane.xlu2 %1013  ;;  %1029 = vadd.xlane.f32.xlu0 %v1028_v6 }
 0x522   : > { %v1023_v54 = vmul.f32 %v3026_v48, %v1014_v52 }
 0x524   : > { %v1025_v55 = vsub.f32 %v1008_v39, %v1023_v54 }
 0x526   : > { %v1027_v56 = vmul.f32 %v1025_v55, %v1025_v55 }
 0x528   : > { %v1031_v57 = vsel %vm446_vm0, %v1027_v56, 0.0 }
 0x529   : > { %1032 = vadd.xlane.f32.xlu2 %v1031_v57 }
 0x594   : > { %v1030_v59 = vpop.xlane.xlu0 %1029 }
 0x595   : > { %v1034_v60 = vmul.f32 %v1030_v59, %v3026_v48 }
 0x597   : > { %v1036_v61 = vadd.f32 1e-05, %v1034_v60  ;;  %v2323_v60 = vld [vmem:[%s3317_s3 + $0x18] sm:$0xff] }
 0x598   : > { %1237 = vmatpush.bf16.msrb.mxu3 %v2323_v60 }
 0x599   : > { %2477 = vrsqrt.f32 %v1036_v61  ;;  %vm1044_vm7 = vweird.f32 %v1036_v61 }
 0x59c   : > { %v1033_v63 = vpop.xlane.xlu2 %1032 }
 0x59d   : > { %v1035_v0 = vmul.f32 %v1033_v63, %v3026_v48 }
 0x59f   : > { %v2478_v1 = vpop.eup %2477  ;;  %v1037_v2 = vadd.f32 1e-05, %v1035_v0  ;;  %v2322_v0 = vld [vmem:[%s3317_s3 + $0x10] sm:$0xff] }
 0x5a0   : > { %v1039_v3 = vmul.f32 %v2478_v1, %v1036_v61  ;;  %vm1045_vm6 = vweird.f32 %v2478_v1  ;;  %1238 = vmatpush.bf16.msrb.mxu3 %v2322_v0 }
 0x5a1   : > { %2479 = vrsqrt.f32 %v1037_v2  ;;  %vm1046_vm8 = vmor %vm1044_vm7, %vm1045_vm6  ;;  %vm1054_vm10 = vweird.f32 %v1037_v2 }
 0x5a2   : > { %v1040_v4 = vmul.f32 %v2478_v1, %v1039_v3 }
 0x5a4   : > { %v1041_v7 = vmul.f32 0.5, %v1040_v4 }
 0x5a6   : > { %v1042_v9 = vsub.f32 1.5, %v1041_v7 }
 0x5a7   : > { %v2480_v10 = vpop.eup %2479 }
 0x5a8   : > { %v1043_v11 = vmul.f32 %v2478_v1, %v1042_v9  ;;  %v1049_v12 = vmul.f32 %v2480_v10, %v1037_v2  ;;  %vm1055_vm9 = vweird.f32 %v2480_v10 }
 0x5a9   : > { %vm1056_vm11 = vmor %vm1054_vm10, %vm1055_vm9  ;;  %vm1844_vm10 = vcmask 1041409  }
 0x5aa   : > { %v1050_v13 = vmul.f32 %v2480_v10, %v1049_v12  ;;  %v1047_v15 = vsel %vm1046_vm8, %v2478_v1, %v1043_v11 }
 0x5ab   : > { %v1058_v20 = vmul.f32 %v1047_v15, %v1024_v50 }
 0x5ac   : > { %v1051_v16 = vmul.f32 0.5, %v1050_v13 }
 0x5ad   : > { %v1061_v14 = vmul.f32 %v1060_v18, %v1058_v20 }
 0x5ae   : > { %v1052_v17 = vsub.f32 1.5, %v1051_v16 }
 0x5af   : > { %v1064_v25 = vadd.f32 %v1063_v23, %v1061_v14 }
 0x5b0   : > { %v1053_v21 = vmul.f32 %v2480_v10, %v1052_v17 }
 0x5b2   : > { %v1057_v22 = vsel %vm1056_vm11, %v2480_v10, %v1053_v21  ;;  %v1201_v21 = vperm.slane %v2872_v8, 6  ;;  %vm1938_vm11 = vcmask 254976  }
 0x5b3   : > { %v1059_v19 = vmul.f32 %v1057_v22, %v1025_v55 }
 0x5b5   : > { %v1062_v24 = vmul.f32 %v1060_v18, %v1059_v19  ;;  %v1204_v19 = vperm.slane %v2872_v8, 7 }
 0x5b7   : > { %v1065_v26 = vadd.f32 %v1063_v23, %v1062_v24 }
 0x5b9   : > { %v1070_v27 = vpack.c.bf16 %v1065_v26, %v1064_v25 }
 0x5bb   : > { %2204 = vmatmul.msk.bf16.vlgmr.msra.gmra.mxu1 %vm446_vm0, %v1070_v27 }
 0x638   : > { %v1096_v32 = vpop.f32.mrf.mxu1 }
 0x639   : > { %v1097_v34 = vadd.f32 %v1096_v32, %v1071_v33 }
 0x63b   : > { %v1101_v37 = vmax.f32 %v1097_v34, 0.0 }
 0x640   : > { %v1098_v35 = vpop.f32.mrf.mxu1 }
 0x641   : > { %v1099_v36 = vadd.f32 %v1098_v35, %v1071_v33 }
 0x643   : > { %v1102_v38 = vmax.f32 %v1099_v36, 0.0 }
 0x645   : > { %v1111_v39 = vpack.c.bf16 %v1102_v38, %v1101_v37 }
 0x647   : > { %2221 = vmatmul.msk.bf16.vlgmr.msra.gmra.mxu2 %vm1137_vm12, %v1111_v39 }
 0x6ca   : > { %v1150_v41 = vpop.f32.mrf.mxu2 }
 0x6cb   : > { %v1151_v43 = vadd.f32 %v1150_v41, %v1112_v40 }
 0x6cd   : > { %v1155_v44 = vadd.f32 %v1151_v43, %v1064_v25 }
 0x6cf   : > { %v1157_v45 = vsel %vm446_vm0, %v1155_v44, 0.0 }
 0x6d0   : > { %1158 = vadd.xlane.f32.xlu2 %v1157_v45 }
 0x6d2   : > { %v1152_v46 = vpop.f32.mrf.mxu2 }
 0x6d3   : > { %v1153_v47 = vadd.f32 %v1152_v46, %v1112_v40 }
 0x6d5   : > { %v1156_v5 = vadd.f32 %v1153_v47, %v1065_v26 }
 0x6d7   : > { %v1160_v49 = vsel %vm446_vm0, %v1156_v5, 0.0 }
 0x6d8   : > { %1161 = vadd.xlane.f32.xlu2 %v1160_v49 }
 0x743   : > { %v1159_v50 = vpop.xlane.xlu2 %1158 }
 0x744   : > { %v1163_v51 = vmul.f32 %v1159_v50, %v3026_v48 }
 0x746   : > { %v1165_v6 = vsub.f32 %v1155_v44, %v1163_v51 }
 0x748   : > { %v1167_v52 = vmul.f32 %v1165_v6, %v1165_v6 }
 0x74a   : > { %v1169_v54 = vsel %vm446_vm0, %v1167_v52, 0.0 }
 0x74b   : > { %1170 = vadd.xlane.f32.xlu2 %v1169_v54  ;;  %v1162_v55 = vpop.xlane.xlu2 %1161 }
 0x74c   : > { %v1164_v56 = vmul.f32 %v1162_v55, %v3026_v48 }
 0x74e   : > { %v1166_v57 = vsub.f32 %v1156_v5, %v1164_v56 }
 0x750   : > { %v1168_v58 = vmul.f32 %v1166_v57, %v1166_v57 }
 0x752   : > { %v1172_v59 = vsel %vm446_vm0, %v1168_v58, 0.0 }
 0x753   : > { %1173 = vadd.xlane.f32.xlu1 %v1172_v59 }
 0x7be   : > { %v1171_v61 = vpop.xlane.xlu2 %1170 }
 0x7bf   : > { %v1175_v62 = vmul.f32 %v1171_v61, %v3026_v48 }
 0x7c1   : > { %v1177_v63 = vadd.f32 1e-05, %v1175_v62 }
 0x7c3   : > { %2481 = vrsqrt.f32 %v1177_v63  ;;  %vm1185_vm14 = vweird.f32 %v1177_v63 }
 0x7c6   : > { %v1174_v1 = vpop.xlane.xlu1 %1173 }
 0x7c7   : > { %v1176_v2 = vmul.f32 %v1174_v1, %v3026_v48 }
 0x7c9   : > { %v2482_v3 = vpop.eup %2481  ;;  %v1178_v4 = vadd.f32 1e-05, %v1176_v2 }
 0x7ca   : > { %v1180_v7 = vmul.f32 %v2482_v3, %v1177_v63  ;;  %vm1186_vm13 = vweird.f32 %v2482_v3 }
 0x7cb   : > { %2483 = vrsqrt.f32 %v1178_v4  ;;  %vm1187_vm15 = vmor %vm1185_vm14, %vm1186_vm13  ;;  %vm1195_vm6 = vweird.f32 %v1178_v4 }
 0x7cc   : > { %v1181_v9 = vmul.f32 %v2482_v3, %v1180_v7 }
 0x7ce   : > { %v1182_v10 = vmul.f32 0.5, %v1181_v9 }
 0x7d0   : > { %v1183_v11 = vsub.f32 1.5, %v1182_v10 }
 0x7d1   : > { %v2484_v12 = vpop.eup %2483 }
 0x7d2   : > { %v1184_v13 = vmul.f32 %v2482_v3, %v1183_v11  ;;  %v1190_v15 = vmul.f32 %v2484_v12, %v1178_v4  ;;  %vm1196_vm5 = vweird.f32 %v2484_v12 }
 0x7d3   : > { %vm1197_vm7 = vmor %vm1195_vm6, %vm1196_vm5 }
 0x7d4   : > { %v1191_v16 = vmul.f32 %v2484_v12, %v1190_v15  ;;  %v1188_v17 = vsel %vm1187_vm15, %v2482_v3, %v1184_v13  ;;  %vm2028_vm15 = vcmask 123904  }
 0x7d5   : > { %v1199_v22 = vmul.f32 %v1188_v17, %v1165_v6 }
 0x7d6   : > { %v1192_v18 = vmul.f32 0.5, %v1191_v16 }
 0x7d7   : > { %v1202_v24 = vmul.f32 %v1201_v21, %v1199_v22 }
 0x7d8   : > { %v1193_v20 = vsub.f32 1.5, %v1192_v18 }
 0x7d9   : > { %v3068_v27 = vadd.f32 %v1204_v19, %v1202_v24 }
 0x7da   : > { %v1194_v23 = vmul.f32 %v2484_v12, %v1193_v20 }
 0x7dc   : > { %v1198_v14 = vsel %vm1197_vm7, %v2484_v12, %v1194_v23 }
 0x7dd   : > { %v1200_v25 = vmul.f32 %v1198_v14, %v1166_v57 }
 0x7df   : > { %v1203_v26 = vmul.f32 %v1201_v21, %v1200_v25 }
 0x7e1   : > { %v3070_v28 = vadd.f32 %v1204_v19, %v1203_v26 }
 0x7e3   : > { %v1214_v29 = vpack.c.bf16 %v3070_v28, %v3068_v27 }
 0x7e5   : > { %2235 = vmatmul.msk.bf16.vlgmr.msrb.gmra.mxu3 %vm446_vm0, %v1214_v29 }
 0x868   : > { %v1240_v8 = vpop.f32.mrf.mxu3 }
 0x869   : > { %v1241_v32 = vadd.f32 %v1240_v8, %v1215_v31 }
 0x86b   : > { %v1245_v33 = vpack.c.bf16 %v1241_v32, %v1241_v32 }
 0x86d   : > { %v1248_v34 = vunpack.c.l.b16 %v1245_v33 }
 0x86f   : > { %v3081_v35 = vpack.c.b16 %v1248_v34, %v1248_v34 }
 0x870   : > { %v1242_v36 = vpop.f32.mrf.mxu3 }
 0x871   : > { %v1243_v37 = vadd.f32 %v1242_v36, %v1215_v31  ;;  %1367 = vrot.lane.b32.xlu1 %v3081_v35, %s2665_s30  ;;  %1250 = vrot.lane.b32.xlu2 %v3081_v35, %s2666_s11 }
 0x873   : > { %v1246_v38 = vpack.c.bf16 %v1243_v37, %v1243_v37 }
 0x875   : > { %v1272_v39 = vunpack.c.l.b16 %v1246_v38 }
 0x877   : > { %v3087_v40 = vpack.c.b16 %v1272_v39, %v1272_v39 }
 0x879   : > { %1274 = vrot.lane.b32.xlu0 %v3087_v40, %s2666_s11  ;;  %1388 = vrot.lane.b32.xlu1 %v3087_v40, %s2664_s28  ;;  %s3354_s11 = smov 56  }
 0x87a   : > { %1365 = vrot.lane.b32.xlu2 %v3081_v35, %s2664_s28  ;;  %s3352_s28 = smov 104  }
 0x881   : > { %1390 = vrot.lane.b32.xlu0 %v3087_v40, %s2665_s30  ;;  %1481 = vrot.lane.b32.xlu1 %v3081_v35, %s2667_s25  ;;  %s3353_s30 = smov 64  }
 0x882   : > { %1506 = vrot.lane.b32.xlu2 %v3087_v40, %s2668_s19 }
 0x889   : > { %1483 = vrot.lane.b32.xlu0 %v3081_v35, %s2668_s19  ;;  %1622 = vrot.lane.b32.xlu1 %v3087_v40, %s2669_s23  ;;  %s3356_s19 = smov 40  }
 0x88a   : > { %1599 = vrot.lane.b32.xlu2 %v3081_v35, %s2669_s23  ;;  %s3357_s23 = smov 8  }
 0x891   : > { %1504 = vrot.lane.b32.xlu0 %v3087_v40, %s2667_s25  ;;  %s3355_s25 = smov 48  }
 0x892   : > { %1620 = vrot.lane.b32.xlu2 %v3087_v40, %s3352_s28 }
 0x899   : > { %1597 = vrot.lane.b32.xlu0 %v3081_v35, %s3352_s28  ;;  %s2053_s28 = scalar_lea.hbm %s3324_s10, %s2846_s24 }
 0x8a1   : > { %1323 = vrot.lane.b32.xlu0 %v3081_v35, %s3353_s30 }
 0x8cb   : > { %v1251_v41 = vpop.permute.xlu2 %1250 }
 0x8cc   : > { %v1256_v43 = vsel %vm471_vm1, %v1251_v41, 0 }
 0x8cd   : > { %1265 = vmatpush.bf16.xpose.msrb.mxu0 %v1256_v43 }
 0x8d4   : > { %2236 = vmatmul.msk.bf16.vlgmr.msrb.gmra.mxu0 %vm471_vm1, %v1245_v33  ;;  %v1366_v46 = vpop.permute.xlu2 %1365 }
 0x8dc   : > { %v1507_v50 = vpop.permute.xlu2 %1506 }
 0x8dd   : > { %v1512_v52 = vsel %vm471_vm1, %v1507_v50, 0 }
 0x8e3   : > { %v1368_v44 = vpop.permute.xlu1 %1367 }
 0x8e4   : > { %v1373_v45 = vsel %vm471_vm1, %v1368_v44, 0  ;;  %v1600_v55 = vpop.permute.xlu2 %1599 }
 0x8e5   : > { %1382 = vmatpush.bf16.xpose.msra.mxu0 %v1373_v45  ;;  %v1605_v58 = vsel %vm471_vm1, %v1600_v55, 0 }
 0x8eb   : > { %v1275_v47 = vpop.permute.xlu0 %1274  ;;  %v1389_v49 = vpop.permute.xlu1 %1388 }
 0x8ec   : > { %v1280_v5 = vsel %vm471_vm1, %v1275_v47, 0  ;;  %2240 = vmatmul.msk.bf16.vlgmr.msra.gmra.mxu0 %vm471_vm1, %v1366_v46  ;;  %v1621_v1 = vpop.permute.xlu2 %1620 }
 0x8ed   : > { %1289 = vmatpush.bf16.xpose.msrb.mxu1 %v1280_v5 }
 0x8f3   : > { %v1391_v51 = vpop.permute.xlu0 %1390  ;;  %v1482_v54 = vpop.permute.xlu1 %1481 }
 0x8f4   : > { %v1396_v6 = vsel %vm471_vm1, %v1391_v51, 0  ;;  %2237 = vmatmul.msk.bf16.vlgmr.msrb.gmra.mxu1 %vm471_vm1, %v1246_v38 }
 0x8f5   : > { %1405 = vmatpush.bf16.xpose.msra.mxu1 %v1396_v6 }
 0x8fb   : > { %v1484_v56 = vpop.permute.xlu0 %1483  ;;  %v1623_v59 = vpop.permute.xlu1 %1622 }
 0x8fc   : > { %v1489_v57 = vsel %vm471_vm1, %v1484_v56, 0  ;;  %v1628_v61 = vsel %vm471_vm1, %v1623_v59, 0 }
 0x8fd   : > { %1521 = vmatpush.bf16.xpose.msrb.mxu1 %v1512_v52  ;;  %1498 = vmatpush.bf16.xpose.msrb.mxu0 %v1489_v57 }
 0x903   : > { %v1505_v60 = vpop.permute.xlu0 %1504 }
 0x904   : > { %2241 = vmatmul.msk.bf16.vlgmr.msra.gmra.mxu1 %vm471_vm1, %v1389_v49  ;;  %2244 = vmatmul.msk.bf16.vlgmr.msrb.gmra.mxu0 %vm471_vm1, %v1482_v54 }
 0x905   : > { %1614 = vmatpush.bf16.xpose.msra.mxu0 %v1605_v58  ;;  %1637 = vmatpush.bf16.xpose.msra.mxu1 %v1628_v61 }
 0x90b   : > { %v1598_v62 = vpop.permute.xlu0 %1597 }
 0x913   : > { %v1324_v63 = vpop.permute.xlu0 %1323 }
 0x914   : > { %v1329_v0 = vsel %vm554_vm2, %v1324_v63, 0  ;;  %2245 = vmatmul.msk.bf16.vlgmr.msrb.gmra.mxu1 %vm471_vm1, %v1505_v60  ;;  %2248 = vmatmul.msk.bf16.vlgmr.msra.gmra.mxu0 %vm471_vm1, %v1598_v62 }
 0x915   : > { %1338 = vmatpush.bf16.msrb.mxu2 %v1329_v0 }
 0x924   : > { %2249 = vmatmul.msk.bf16.vlgmr.msra.gmra.mxu1 %vm471_vm1, %v1621_v1 }
 0x951   : > { %v1267_v2 = vpop.f32.mrf.mxu0 }
 0x952   : > { %v1295_v3 = vmul.f32 0.35355338, %v1267_v2 }
 0x954   : > { %v1297_v4 = vadd.f32 %v2924_v42, %v1295_v3 }
 0x956   : > { %v1299_v7 = vsel %vm471_vm1, %v1297_v4, -inf }
 0x957   : > { %1300 = vmax.xlane.f32.xlu1 %v1299_v7 }
 0x959   : > { %v1269_v9 = vpop.f32.mrf.mxu0 }
 0x969   : > { %v1384_v10 = vpop.f32.mrf.mxu0 }
 0x96a   : > { %v1411_v11 = vmul.f32 0.35355338, %v1384_v10 }
 0x96c   : > { %v1413_v12 = vadd.f32 %v2924_v42, %v1411_v11 }
 0x96e   : > { %v1415_v13 = vsel %vm471_vm1, %v1413_v12, -inf }
 0x96f   : > { %1416 = vmax.xlane.f32.xlu2 %v1415_v13 }
 0x971   : > { %v1291_v15 = vpop.f32.mrf.mxu1  ;;  %v1386_v16 = vpop.f32.mrf.mxu0 }
 0x972   : > { %v1296_v17 = vmul.f32 0.35355338, %v1291_v15 }
 0x974   : > { %v1298_v18 = vadd.f32 %v2931_v53, %v1296_v17 }
 0x976   : > { %v1302_v20 = vsel %vm471_vm1, %v1298_v18, -inf }
 0x977   : > { %1303 = vmax.xlane.f32.xlu0 %v1302_v20 }
 0x979   : > { %v1293_v21 = vpop.f32.mrf.mxu1 }
 0x981   : > { %v1407_v22 = vpop.f32.mrf.mxu1  ;;  %v1500_v23 = vpop.f32.mrf.mxu0 }
 0x982   : > { %v1412_v14 = vmul.f32 0.35355338, %v1407_v22  ;;  %v1527_v19 = vmul.f32 0.35355338, %v1500_v23 }
 0x984   : > { %v1414_v24 = vadd.f32 %v2931_v53, %v1412_v14  ;;  %v1529_v25 = vadd.f32 %v2924_v42, %v1527_v19 }
 0x986   : > { %v1418_v26 = vsel %vm471_vm1, %v1414_v24, -inf  ;;  %v1531_v29 = vsel %vm471_vm1, %v1529_v25, -inf }
 0x987   : > { %1419 = vmax.xlane.f32.xlu1 %v1418_v26  ;;  %1532 = vmax.xlane.f32.xlu0 %v1531_v29 }
 0x989   : > { %v1409_v31 = vpop.f32.mrf.mxu1  ;;  %v1502_v8 = vpop.f32.mrf.mxu0 }
 0x991   : > { %v1523_v32 = vpop.f32.mrf.mxu1  ;;  %v1616_v33 = vpop.f32.mrf.mxu0 }
 0x992   : > { %v1528_v34 = vmul.f32 0.35355338, %v1523_v32  ;;  %v1643_v36 = vmul.f32 0.35355338, %v1616_v33 }
 0x994   : > { %v1530_v37 = vadd.f32 %v2931_v53, %v1528_v34  ;;  %v3144_v38 = vadd.f32 %v2924_v42, %v1643_v36 }
 0x996   : > { %v1534_v39 = vsel %vm471_vm1, %v1530_v37, -inf  ;;  %v1647_v41 = vsel %vm471_vm1, %v3144_v38, -inf }
 0x997   : > { %1535 = vmax.xlane.f32.xlu2 %v1534_v39  ;;  %1648 = vmax.xlane.f32.xlu1 %v1647_v41 }
 0x999   : > { %v1525_v43 = vpop.f32.mrf.mxu1  ;;  %v1618_v44 = vpop.f32.mrf.mxu0 }
 0x9a1   : > { %v1639_v45 = vpop.f32.mrf.mxu1 }
 0x9a2   : > { %v1644_v46 = vmul.f32 0.35355338, %v1639_v45 }
 0x9a4   : > { %v1646_v47 = vadd.f32 %v2931_v53, %v1644_v46 }
 0x9a6   : > { %v1650_v5 = vsel %vm471_vm1, %v1646_v47, -inf }
 0x9a7   : > { %1651 = vmax.xlane.f32.xlu0 %v1650_v5 }
 0x9a9   : > { %v1641_v49 = vpop.f32.mrf.mxu1 }
 0x9af   : > { %1344 = vrot.lane.b32.xlu2 %v3087_v40, %s3353_s30  ;;  %s3360_s30 = sshll.u32 %s2829_s5, 1 }
 0x9b0   : > { %1460 = vrot.lane.b32.xlu1 %v3087_v40, %s3354_s11 }
 0x9b8   : > { %1555 = vrot.lane.b32.xlu1 %v3081_v35, %s3355_s25 }
 0x9bb   : > { %1439 = vrot.lane.b32.xlu0 %v3081_v35, %s3354_s11  ;;  %s411_s11 = scalar_lea.vmem [#allocation7], %s3360_s30 }
 0x9ca   : > { %v1301_v42 = vpop.xlane.xlu1 %1300 }
 0x9cb   : > { %v1305_v50 = vsub.f32 %v1297_v4, %v1301_v42 }
 0x9cd   : > { %v1307_v51 = vmul.f32 1.442695, %v1305_v50 }
 0x9cf   : > { %2485 = vpow2.f32 %v1307_v51 }
 0x9d5   : > { %v3159_v53 = vpop.eup %2485 }
 0x9d6   : > { %v1311_v6 = vsel %vm471_vm1, %v3159_v53, 0.0 }
 0x9d8   : > { %1312 = vadd.xlane.f32.xlu2 %v1311_v6 }
 0x9e2   : > { %v1417_v52 = vpop.xlane.xlu2 %1416 }
 0x9e3   : > { %v1421_v56 = vsub.f32 %v1413_v12, %v1417_v52 }
 0x9e5   : > { %v1423_v58 = vmul.f32 1.442695, %v1421_v56 }
 0x9ea   : > { %v1304_v54 = vpop.xlane.xlu0 %1303 }
 0x9eb   : > { %v1306_v55 = vsub.f32 %v1298_v18, %v1304_v54 }
 0x9ed   : > { %v1309_v57 = vmul.f32 1.442695, %v1306_v55 }
 0x9ef   : > { %2487 = vpow2.f32 %v1309_v57 }
 0x9f0   : > { %2489 = vpow2.f32 %v1423_v58 }
 0x9f5   : > { %v3163_v59 = vpop.eup %2487 }
 0x9f6   : > { %v1314_v60 = vsel %vm471_vm1, %v3163_v59, 0.0  ;;  %v3167_v63 = vpop.eup %2489 }
 0x9f7   : > { %1315 = vadd.xlane.f32.xlu1 %v1314_v60  ;;  %v1427_v4 = vsel %vm471_vm1, %v3167_v63, 0.0 }
 0x9fa   : > { %v1420_v61 = vpop.xlane.xlu1 %1419  ;;  %v1533_v62 = vpop.xlane.xlu0 %1532 }
 0x9fb   : > { %v1422_v0 = vsub.f32 %v1414_v24, %v1420_v61  ;;  %v1537_v1 = vsub.f32 %v1529_v25, %v1533_v62 }
 0x9fd   : > { %v1425_v2 = vmul.f32 1.442695, %v1422_v0  ;;  %v1539_v3 = vmul.f32 1.442695, %v1537_v1 }
 0x9ff   : > { %2491 = vpow2.f32 %v1425_v2  ;;  %1428 = vadd.xlane.f32.xlu1 %v1427_v4 }
 0xa00   : > { %2493 = vpow2.f32 %v1539_v3 }
 0xa05   : > { %v3171_v7 = vpop.eup %2491 }
 0xa06   : > { %v3173_v9 = vpop.eup %2493  ;;  %v1430_v10 = vsel %vm471_vm1, %v3171_v7, 0.0 }
 0xa07   : > { %v1543_v11 = vsel %vm471_vm1, %v3173_v9, 0.0  ;;  %1431 = vadd.xlane.f32.xlu1 %v1430_v10 }
 0xa08   : > { %1544 = vadd.xlane.f32.xlu2 %v1543_v11 }
 0xa0a   : > { %v1536_v12 = vpop.xlane.xlu2 %1535  ;;  %v1649_v21 = vpop.xlane.xlu1 %1648 }
 0xa0b   : > { %v1538_v13 = vsub.f32 %v1530_v37, %v1536_v12  ;;  %v1653_v8 = vsub.f32 %v3144_v38, %v1649_v21 }
 0xa0d   : > { %v1541_v15 = vmul.f32 1.442695, %v1538_v13  ;;  %v1655_v32 = vmul.f32 1.442695, %v1653_v8 }
 0xa0f   : > { %2495 = vpow2.f32 %v1541_v15 }
 0xa12   : > { %v1345_v16 = vpop.permute.xlu2 %1344 }
 0xa13   : > { %v1350_v17 = vsel %vm554_vm2, %v1345_v16, 0 }
 0xa14   : > { %1359 = vmatpush.bf16.msra.mxu3 %v1350_v17 }
 0xa15   : > { %v3180_v18 = vpop.eup %2495 }
 0xa16   : > { %v1546_v20 = vsel %vm471_vm1, %v3180_v18, 0.0 }
 0xa17   : > { %1547 = vadd.xlane.f32.xlu0 %v1546_v20 }
 0xa1a   : > { %v1652_v22 = vpop.xlane.xlu0 %1651 }
 0xa1b   : > { %v1654_v23 = vsub.f32 %v1646_v47, %v1652_v22 }
 0xa1d   : > { %v1657_v14 = vmul.f32 1.442695, %v1654_v23 }
 0xa1f   : > { %2497 = vpow2.f32 %v1657_v14 }
 0xa20   : > { %1576 = vrot.lane.b32.xlu1 %v3087_v40, %s3355_s25  ;;  %2499 = vpow2.f32 %v1655_v32  ;;  %s2055_s25 = sshll.u32 %s411_s11, 4  ;;  %s2056_s25 = int_to_ptr.vmem [resolvable:$true] %s2055_s25 }
 0xa22   : > { %v1461_v19 = vpop.permute.xlu1 %1460 }
 0xa23   : > { %v1466_v24 = vsel %vm554_vm2, %v1461_v19, 0 }
 0xa24   : > { %1475 = vmatpush.bf16.msrb.mxu3 %v1466_v24 }
 0xa25   : > { %v2498_v25 = vpop.eup %2497 }
 0xa26   : > { %v1662_v26 = vsel %vm471_vm1, %v2498_v25, 0.0  ;;  %v2500_v33 = vpop.eup %2499 }
 0xa27   : > { %1663 = vadd.xlane.f32.xlu2 %v1662_v26  ;;  %v1659_v34 = vsel %vm471_vm1, %v2500_v33, 0.0 }
 0xa2a   : > { %v1556_v39 = vpop.permute.xlu1 %1555 }
 0xa2b   : > { %1671 = vrot.lane.b32.xlu0 %v3081_v35, %s3356_s19  ;;  %v1561_v43 = vsel %vm554_vm2, %v1556_v39, 0 }
 0xa2d   : > { %v1440_v29 = vpop.permute.xlu0 %1439 }
 0xa2e   : > { %v1445_v31 = vsel %vm554_vm2, %v1440_v29, 0 }
 0xa2f   : > { %1454 = vmatpush.bf16.msra.mxu2 %v1445_v31 }
 0xa3f   : > { %1692 = vrot.lane.b32.xlu2 %v3087_v40, %s3356_s19  ;;  %s2057_s19 = sshll.u32 %s2053_s28, 4  ;;  %s2058_s19 = int_to_ptr.hbm [resolvable:$true] %s2057_s19 }
 0xa4a   : > { %1660 = vadd.xlane.f32.xlu1 %v1659_v34  ;;  %v2325_v34 = vld [vmem:[%s3318_s4 + $0x18] sm:$0xff] }
 0xa4b   : > { %v1313_v36 = vpop.xlane.xlu2 %1312  ;;  %1771 = vmatpush.bf16.msrb.mxu0 %v2325_v34 }
 0xa4c   : > { %2501 = vrcp.f32 %v1313_v36  ;;  %v2324_v36 = vld [vmem:[%s3318_s4 + $0x10] sm:$0xff] }
 0xa4f   : > { %1772 = vmatpush.bf16.msrb.mxu0 %v2324_v36 }
 0xa52   : > { %v2502_v37 = vpop.eup %2501 }
 0xa53   : > { %v1319_v35 = vmul.f32 %v2502_v37, %v3159_v53 }
 0xa55   : > { %v1321_v41 = vpack.c.bf16 %v1319_v35, %v1319_v35 }
 0xa57   : > { %2238 = vmatmul.msk.bf16.vlgmr.msrb.gmra.mxu2 %vm471_vm1, %v1321_v41 }
 0xa58   : > { %1570 = vmatpush.bf16.msrb.mxu2 %v1561_v43 }
 0xa6a   : > { %v1316_v38 = vpop.xlane.xlu1 %1315 }
 0xa6b   : > { %2503 = vrcp.f32 %v1316_v38 }
 0xa71   : > { %v2504_v40 = vpop.eup %2503 }
 0xa72   : > { %v1320_v44 = vmul.f32 %v2504_v40, %v3163_v59  ;;  %v1429_v45 = vpop.xlane.xlu1 %1428 }
 0xa73   : > { %2505 = vrcp.f32 %v1429_v45 }
 0xa74   : > { %v1322_v46 = vpack.c.bf16 %v1320_v44, %v1320_v44 }
 0xa76   : > { %2239 = vmatmul.msk.bf16.vlgmr.msra.gmra.mxu3 %vm471_vm1, %v1322_v46 }
 0xa79   : > { %v2506_v47 = vpop.eup %2505 }
 0xa7a   : > { %v1435_v5 = vmul.f32 %v2506_v47, %v3167_v63  ;;  %v1432_v49 = vpop.xlane.xlu1 %1431 }
 0xa7b   : > { %2507 = vrcp.f32 %v1432_v49  ;;  %v1545_v50 = vpop.xlane.xlu2 %1544 }
 0xa7c   : > { %v1437_v42 = vpack.c.bf16 %v1435_v5, %v1435_v5  ;;  %2509 = vrcp.f32 %v1545_v50 }
 0xa7e   : > { %2242 = vmatmul.msk.bf16.vlgmr.msra.gmra.mxu2 %vm471_vm1, %v1437_v42 }
 0xa81   : > { %v2508_v51 = vpop.eup %2507 }
 0xa82   : > { %v1436_v53 = vmul.f32 %v2508_v51, %v3171_v7  ;;  %v2510_v52 = vpop.eup %2509 }
 0xa83   : > { %v1551_v54 = vmul.f32 %v2510_v52, %v3173_v9 }
 0xa84   : > { %v1438_v6 = vpack.c.bf16 %v1436_v53, %v1436_v53  ;;  %v1749_v53 = vperm.slane %v3078_v30, 1 }
 0xa85   : > { %v1553_v56 = vpack.c.bf16 %v1551_v54, %v1551_v54 }
 0xa86   : > { %2243 = vmatmul.msk.bf16.vlgmr.msrb.gmra.mxu3 %vm471_vm1, %v1438_v6 }
 0xa8a   : > { %v1548_v55 = vpop.xlane.xlu0 %1547 }
 0xa8b   : > { %2511 = vrcp.f32 %v1548_v55 }
 0xa8e   : > { %2246 = vmatmul.msk.bf16.vlgmr.msrb.gmra.mxu2 %vm471_vm1, %v1553_v56 }
 0xa91   : > { %v2512_v57 = vpop.eup %2511 }
 0xa92   : > { %v1577_v58 = vpop.permute.xlu1 %1576  ;;  %v1552_v59 = vmul.f32 %v2512_v57, %v3180_v18 }
 0xa93   : > { %v1582_v60 = vsel %vm554_vm2, %v1577_v58, 0 }
 0xa94   : > { %1591 = vmatpush.bf16.msra.mxu3 %v1582_v60  ;;  %v1554_v61 = vpack.c.bf16 %v1552_v59, %v1552_v59 }
 0xa97   : > { %2247 = vmatmul.msk.bf16.vlgmr.msra.gmra.mxu3 %vm471_vm1, %v1554_v61 }
 0xa9a   : > { %v1664_v62 = vpop.xlane.xlu2 %1663 }
 0xa9b   : > { %2513 = vrcp.f32 %v1664_v62 }
 0xa9d   : > { %v1672_v63 = vpop.permute.xlu0 %1671 }
 0xa9e   : > { %v1677_v0 = vsel %vm554_vm2, %v1672_v63, 0 }
 0xa9f   : > { %1686 = vmatpush.bf16.msra.mxu2 %v1677_v0 }
 0xaa1   : > { %v2514_v1 = vpop.eup %2513 }
 0xaa2   : > { %v1668_v2 = vmul.f32 %v2514_v1, %v2498_v25  ;;  %v1693_v3 = vpop.permute.xlu2 %1692 }
 0xaa3   : > { %v1698_v4 = vsel %vm554_vm2, %v1693_v3, 0 }
 0xaa4   : > { %v1670_v7 = vpack.c.bf16 %v1668_v2, %v1668_v2  ;;  %1707 = vmatpush.bf16.msrb.mxu3 %v1698_v4 }
 0xaa7   : > { %2251 = vmatmul.msk.bf16.vlgmr.msrb.gmra.mxu3 %vm471_vm1, %v1670_v7 }
 0xabd   : > { %v1661_v9 = vpop.xlane.xlu1 %1660 }
 0xabe   : > { %2515 = vrcp.f32 %v1661_v9 }
 0xac4   : > { %v2516_v10 = vpop.eup %2515 }
 0xac5   : > { %v1667_v11 = vmul.f32 %v2516_v10, %v2500_v33  ;;  %v2327_v10 = vld [vmem:[#allocation5 + $0x18] sm:$0xff] }
 0xac6   : > { %1868 = vmatpush.bf16.msrb.mxu1 %v2327_v10 }
 0xac7   : > { %v1669_v12 = vpack.c.bf16 %v1667_v11, %v1667_v11  ;;  %v2326_v11 = vld [vmem:[#allocation5 + $0x10] sm:$0xff] }
 0xac9   : > { %2250 = vmatmul.msk.bf16.vlgmr.msra.gmra.mxu2 %vm471_vm1, %v1669_v12 }
 0xaca   : > { %1869 = vmatpush.bf16.msrb.mxu1 %v2326_v11 }
 0xada   : > { %v1340_v13 = vpop.f32.mrf.mxu2 }
 0xae2   : > { %v1342_v15 = vpop.f32.mrf.mxu2 }
 0xaf9   : > { %v1361_v16 = vpop.f32.mrf.mxu3 }
 0xb01   : > { %v1363_v17 = vpop.f32.mrf.mxu3  ;;  %v1456_v18 = vpop.f32.mrf.mxu2 }
 0xb09   : > { %v1458_v20 = vpop.f32.mrf.mxu2  ;;  %v1477_v21 = vpop.f32.mrf.mxu3 }
 0xb0a   : > { %v2425_v22 = vpack.i.bf16 %v1477_v21, %v1456_v18  ;;  %v2331_v18 = vld [vmem:[%s3320_s6 + $0x38] sm:$0xff]  ;;  %v2330_v21 = vld [vmem:[%s3320_s6 + $0x30] sm:$0xff] }
 0xb0b   : > { %1918 = vmatpush.bf16.msrb.mxu2 %v2331_v18 }
 0xb0c   : > { %2426 = vrot.lane.b32.xlu0 %v2425_v22, %s3357_s23  ;;  %s2043_s23 = scalar_lea.sflag [#allocation4], %s2829_s5 }
 0xb0f   : > { %1919 = vmatpush.bf16.msrb.mxu2 %v2330_v21 }
 0xb11   : > { %v1479_v23 = vpop.f32.mrf.mxu3  ;;  %v1572_v14 = vpop.f32.mrf.mxu2 }
 0xb19   : > { %v1574_v19 = vpop.f32.mrf.mxu2 }
 0xb1a   : > { %v1593_v24 = vpop.f32.mrf.mxu3 }
 0xb1b   : > { %v2430_v25 = vpack.i.bf16 %v1593_v24, %v1572_v14 }
 0xb1d   : > { %2431 = vrot.lane.b32.xlu2 %v2430_v25, %s3358_s29  ;;  %v1825_v25 = vperm.slane %v3078_v30, 2  ;;  %s2601_s29 = sshra.s32 %s2058_s19, 4  ;;  %s2602_s29 = int_to_ptr.hbm [resolvable:$true] %s2601_s29 }
 0xb1e   : > { %p2608_p9 = scmp.lt.s32.totalorder %s2602_s29, %s3324_s10 }
 0xb22   : > { %v1595_v26 = vpop.f32.mrf.mxu3 }
 0xb2a   : > { %v1709_v29 = vpop.f32.mrf.mxu3 }
 0xb32   : > { %v1711_v31 = vpop.f32.mrf.mxu3 }
 0xb33   : > { %v1828_v31 = vperm.slane %v3078_v30, 3 }
 0xb4c   : > { %v1688_v8 = vpop.f32.mrf.mxu2 }
 0xb4d   : > { %v2435_v32 = vpack.i.bf16 %v1709_v29, %v1688_v8 }
 0xb4f   : > { %2436 = vrot.lane.b32.xlu0 %v2435_v32, %s3359_s15  ;;  %s2603_s15 = scalar_lea.hbm %s2602_s29, 2 }
 0xb50   : > { %p2604_p1 = scmp.ne.s32.totalorder %s2602_s29, %s2603_s15  ;;  %p2609_p2 = scmp.lt.s32.totalorder %s2607_s26, %s2603_s15 }
 0xb52   : > { %p2605_p4 = pnand %p2604_p1, %p2801_p7  ;;  %p2610_p10 = por %p2609_p2, %p2608_p9 }
 0xb54   : > { %v1690_v33 = vpop.f32.mrf.mxu2  ;;  %p2606_p11 = pneg %p2605_p4 }
 0xb56   : > { %p2611_p12 = pnand %p2610_p10, %p2606_p11 }
 0xb77   : > { %v2432_v41 = vpop.permute.xlu2 %2431 }
 0xb78   : > { %v2434_v40 = vunpack.i.h.bf16 %v2432_v41  ;;  %v2433_v44 = vunpack.i.l.bf16 %v2432_v41 }
 0xb7e   : > { %v2427_v37 = vpop.permute.xlu0 %2426 }
 0xb7f   : > { %v2429_v35 = vunpack.i.h.bf16 %v2427_v37  ;;  %v2428_v39 = vunpack.i.l.bf16 %v2427_v37 }
 0xb81   : > { %v1738_v43 = vsel %vm471_vm1, %v1361_v16, %v2429_v35  ;;  %v1737_v38 = vsel %vm471_vm1, %v1340_v13, %v2428_v39 }
 0xb82   : > { %v1739_v5 = vsel %vm966_vm3, %v1737_v38, %v2433_v44  ;;  %v1740_v49 = vsel %vm966_vm3, %v1738_v43, %v2434_v40 }
 0xbc1   : > { %v2437_v45 = vpop.permute.xlu0 %2436 }
 0xbc2   : > { %v2439_v46 = vunpack.i.h.bf16 %v2437_v45  ;;  %v2438_v47 = vunpack.i.l.bf16 %v2437_v45 }
 0xbc4   : > { %v1741_v42 = vsel %vm969_vm4, %v1739_v5, %v2438_v47  ;;  %v1742_v50 = vsel %vm969_vm4, %v1740_v49, %v2439_v46  ;;  %v2329_v49 = vld [vmem:[%s3320_s6 + $0x28] sm:$0xff] }
 0xbc5   : > { %v1748_v51 = vpack.c.bf16 %v1742_v50, %v1741_v42  ;;  %1920 = vmatpush.bf16.msrb.mxu2 %v2329_v49  ;;  %v2328_v42 = vld [vmem:[%s3320_s6 + $0x20] sm:$0xff]  ;;  %v1838_v50 = vperm.slane %v3078_v30, 4 }
 0xbc7   : > { %2264 = vmatmul.msk.bf16.vlgmr.msrb.gmra.mxu0 %vm446_vm0, %v1748_v51 }
 0xbc9   : > { %1921 = vmatpush.bf16.msrb.mxu2 %v2328_v42 }
 0xc44   : > { %v1774_v6 = vpop.f32.mrf.mxu0 }
 0xc45   : > { %v1775_v52 = vadd.f32 %v1774_v6, %v1749_v53 }
 0xc47   : > { %v1779_v54 = vadd.f32 %v1775_v52, %v3068_v27 }
 0xc49   : > { %v1781_v55 = vsel %vm446_vm0, %v1779_v54, 0.0 }
 0xc4a   : > { %1782 = vadd.xlane.f32.xlu0 %v1781_v55  ;;  %v1886_v55 = vperm.slane %v3078_v30, 5 }
 0xc4c   : > { %v1776_v56 = vpop.f32.mrf.mxu0 }
 0xc4d   : > { %v1777_v57 = vadd.f32 %v1776_v56, %v1749_v53 }
 0xc4f   : > { %v1780_v58 = vadd.f32 %v1777_v57, %v3070_v28 }
 0xc51   : > { %v1784_v59 = vsel %vm446_vm0, %v1780_v58, 0.0 }
 0xc52   : > { %1785 = vadd.xlane.f32.xlu2 %v1784_v59 }
 0xcbd   : > { %v1783_v60 = vpop.xlane.xlu0 %1782 }
 0xcbe   : > { %v1787_v63 = vmul.f32 %v1783_v60, %v3026_v48 }
 0xcc0   : > { %v1789_v2 = vsub.f32 %v1779_v54, %v1787_v63 }
 0xcc2   : > { %v1791_v3 = vmul.f32 %v1789_v2, %v1789_v2 }
 0xcc4   : > { %v1793_v4 = vsel %vm446_vm0, %v1791_v3, 0.0 }
 0xcc5   : > { %v1786_v61 = vpop.xlane.xlu2 %1785 }
 0xcc6   : > { %v1788_v62 = vmul.f32 %v1786_v61, %v3026_v48 }
 0xcc8   : > { %v1790_v0 = vsub.f32 %v1780_v58, %v1788_v62 }
 0xcca   : > { %v1792_v1 = vmul.f32 %v1790_v0, %v1790_v0 }
 0xccc   : > { %v1796_v27 = vsel %vm446_vm0, %v1792_v1, 0.0 }
 0xccd   : > { %1797 = vadd.xlane.f32.xlu1 %v1796_v27 }
 0xcd5   : > { %1794 = vadd.xlane.f32.xlu1 %v1793_v4 }
 0xd40   : > { %v1798_v28 = vpop.xlane.xlu1 %1797 }
 0xd41   : > { %v1800_v7 = vmul.f32 %v1798_v28, %v3026_v48 }
 0xd43   : > { %v1802_v9 = vadd.f32 1e-05, %v1800_v7 }
 0xd45   : > { %2517 = vrsqrt.f32 %v1802_v9  ;;  %vm1819_vm2 = vweird.f32 %v1802_v9 }
 0xd48   : > { %v1795_v12 = vpop.xlane.xlu1 %1794 }
 0xd49   : > { %v1799_v13 = vmul.f32 %v1795_v12, %v3026_v48 }
 0xd4b   : > { %v2518_v15 = vpop.eup %2517  ;;  %v1801_v16 = vadd.f32 1e-05, %v1799_v13  ;;  %v2333_v13 = vld [vmem:[%s3322_s8 + $0x8] sm:$0xff] }
 0xd4c   : > { %v1814_v17 = vmul.f32 %v2518_v15, %v1802_v9  ;;  %vm1820_vm1 = vweird.f32 %v2518_v15  ;;  %2021 = vmatpush.bf16.msra.mxu3 %v2333_v13 }
 0xd4d   : > { %2519 = vrsqrt.f32 %v1801_v16  ;;  %vm1821_vm3 = vmor %vm1819_vm2, %vm1820_vm1  ;;  %vm1809_vm8 = vweird.f32 %v1801_v16 }
 0xd4e   : > { %v1815_v20 = vmul.f32 %v2518_v15, %v1814_v17 }
 0xd50   : > { %v1816_v22 = vmul.f32 0.5, %v1815_v20 }
 0xd52   : > { %v1817_v23 = vsub.f32 1.5, %v1816_v22 }
 0xd53   : > { %v2520_v14 = vpop.eup %2519 }
 0xd54   : > { %v1818_v19 = vmul.f32 %v2518_v15, %v1817_v23  ;;  %v1804_v24 = vmul.f32 %v2520_v14, %v1801_v16  ;;  %vm1810_vm4 = vweird.f32 %v2520_v14  ;;  %v2332_v16 = vld [vmem:[%s3322_s8] sm:$0xff] }
 0xd55   : > { %vm1811_vm9 = vmor %vm1809_vm8, %vm1810_vm4  ;;  %2022 = vmatpush.bf16.msra.mxu3 %v2332_v16 }
 0xd56   : > { %v1822_v26 = vsel %vm1821_vm3, %v2518_v15, %v1818_v19  ;;  %v1805_v29 = vmul.f32 %v2520_v14, %v1804_v24  ;;  %v1977_v19 = vperm.slane %v3078_v30, 6  ;;  %v1980_v24 = vperm.slane %v3078_v30, 7  ;;  %v2442_v30 = vld [vmem:[%s3323_s9] ss:$0 sm:$0xff] }
 0xd57   : > { %v1824_v8 = vmul.f32 %v1822_v26, %v1790_v0 }
 0xd58   : > { %v1806_v32 = vmul.f32 0.5, %v1805_v29 }
 0xd59   : > { %v1827_v33 = vmul.f32 %v1825_v25, %v1824_v8 }
 0xd5a   : > { %v1807_v34 = vsub.f32 1.5, %v1806_v32 }
 0xd5b   : > { %v1830_v36 = vadd.f32 %v1828_v31, %v1827_v33 }
 0xd5c   : > { %v1808_v37 = vmul.f32 %v2520_v14, %v1807_v34 }
 0xd5d   : > { %v1837_v39 = vpack.c.bf16 %v1830_v36, %v1830_v36 }
 0xd5e   : > { %v1812_v35 = vsel %vm1811_vm9, %v2520_v14, %v1808_v37 }
 0xd5f   : > { %v1823_v41 = vmul.f32 %v1812_v35, %v1789_v2  ;;  %v1842_v38 = vunpack.c.l.b16 %v1837_v39 }
 0xd61   : > { %v1826_v43 = vmul.f32 %v1825_v25, %v1823_v41  ;;  %v1843_v46 = vrot.slane %v1842_v38, 7 }
 0xd63   : > { %v1829_v40 = vadd.f32 %v1828_v31, %v1826_v43 }
 0xd65   : > { %v1836_v44 = vpack.c.bf16 %v1829_v40, %v1829_v40 }
 0xd67   : > { %v1841_v45 = vunpack.c.l.b16 %v1836_v44 }
 0xd69   : > { %v1845_v47 = vsel %vm1844_vm10, %v1843_v46, %v1841_v45 }
 0xd6a   : > { %v1846_v5 = vpack.c.b16 %v1845_v47, %v1845_v47 }
 0xd6c   : > { %2273 = vmatmul.msk.bf16.vlgmr.msrb.gmra.mxu1 %vm446_vm0, %v1846_v5 }
 0xde9   : > { %v1871_v51 = vpop.f32.mrf.mxu1 }
 0xdea   : > { %v1872_v53 = vadd.f32 %v1871_v51, %v1838_v50 }
 0xdec   : > { %v1875_v6 = vmax.f32 %v1872_v53, 0.0 }
 0xdee   : > { %v1885_v52 = vpack.c.bf16 %v1875_v6, %v1875_v6 }
 0xdf0   : > { %2298 = vmatmul.msk.bf16.vlgmr.msrb.gmra.mxu2 %vm1137_vm12, %v1885_v52 }
 0xdf1   : > { %v1873_v54 = vpop.f32.mrf.mxu1 }
 0xe73   : > { %v1923_v56 = vpop.f32.mrf.mxu2 }
 0xe74   : > { %v1924_v57 = vadd.f32 %v1923_v56, %v1886_v55 }
 0xe76   : > { %v1928_v58 = vrot.slane %v1924_v57, 1  ;;  %v1931_v60 = vadd.f32 %v1924_v57, %v1829_v40 }
 0xe78   : > { %v1932_v59 = vadd.f32 %v1928_v58, %v1830_v36 }
 0xe7a   : > { %v1935_v61 = vrot.slane %v1932_v59, 7 }
 0xe7b   : > { %v1925_v62 = vpop.f32.mrf.mxu2 }
 0xe7c   : > { %v1936_v63 = vsel %vm1844_vm10, %v1935_v61, %v1931_v60 }
 0xe7d   : > { %v1939_v0 = vsel %vm1938_vm11, %v1936_v63, 0.0 }
 0xe7e   : > { %1940 = vadd.xlane.f32.xlu1 %v1939_v0 }
 0xef1   : > { %v1941_v1 = vpop.xlane.xlu1 %1940 }
 0xef2   : > { %v1942_v2 = vmul.f32 %v1941_v1, %v3026_v48 }
 0xef4   : > { %v1944_v27 = vrot.slane %v1942_v2, 1  ;;  %v1947_v3 = vsub.f32 %v1931_v60, %v1942_v2 }
 0xef6   : > { %v1948_v4 = vsub.f32 %v1932_v59, %v1944_v27  ;;  %v1949_v7 = vmul.f32 %v1947_v3, %v1947_v3 }
 0xef8   : > { %v1950_v28 = vmul.f32 %v1948_v4, %v1948_v4 }
 0xefa   : > { %v1953_v9 = vrot.slane %v1950_v28, 7 }
 0xefc   : > { %v1954_v10 = vsel %vm1844_vm10, %v1953_v9, %v1949_v7 }
 0xefd   : > { %v1956_v11 = vsel %vm1938_vm11, %v1954_v10, 0.0 }
 0xefe   : > { %1957 = vadd.xlane.f32.xlu1 %v1956_v11 }
 0xf71   : > { %v1958_v12 = vpop.xlane.xlu1 %1957 }
 0xf72   : > { %v1959_v15 = vmul.f32 %v1958_v12, %v3026_v48 }
 0xf74   : > { %v1960_v17 = vadd.f32 1e-05, %v1959_v15 }
 0xf76   : > { %2521 = vrsqrt.f32 %v1960_v17  ;;  %vm1967_vm13 = vweird.f32 %v1960_v17 }
 0xf7c   : > { %v2522_v18 = vpop.eup %2521 }
 0xf7d   : > { %v1962_v20 = vmul.f32 %v2522_v18, %v1960_v17  ;;  %vm1968_vm12 = vweird.f32 %v2522_v18 }
 0xf7e   : > { %vm1969_vm14 = vmor %vm1967_vm13, %vm1968_vm12 }
 0xf7f   : > { %v1963_v21 = vmul.f32 %v2522_v18, %v1962_v20 }
 0xf81   : > { %v1964_v22 = vmul.f32 0.5, %v1963_v21 }
 0xf83   : > { %v1965_v23 = vsub.f32 1.5, %v1964_v22 }
 0xf85   : > { %v1966_v14 = vmul.f32 %v2522_v18, %v1965_v23 }
 0xf87   : > { %v1970_v48 = vsel %vm1969_vm14, %v2522_v18, %v1966_v14 }
 0xf88   : > { %v1972_v25 = vrot.slane %v1970_v48, 1  ;;  %v1975_v26 = vmul.f32 %v1970_v48, %v1947_v3 }
 0xf8a   : > { %v1976_v29 = vmul.f32 %v1972_v25, %v1948_v4  ;;  %v1978_v31 = vmul.f32 %v1977_v19, %v1975_v26 }
 0xf8c   : > { %v1979_v8 = vmul.f32 %v1977_v19, %v1976_v29  ;;  %v1981_v32 = vadd.f32 %v1980_v24, %v1978_v31 }
 0xf8e   : > { %v1982_v33 = vadd.f32 %v1980_v24, %v1979_v8  ;;  %v1987_v34 = vpack.c.bf16 %v1981_v32, %v1981_v32 }
 0xf90   : > { %v1988_v36 = vpack.c.bf16 %v1982_v33, %v1982_v33  ;;  %v1995_v35 = vunpack.c.l.b16 %v1987_v34 }
 0xf92   : > { %v1996_v37 = vunpack.c.l.b16 %v1988_v36 }
 0xf94   : > { %v1997_v39 = vrot.slane %v1996_v37, 7 }
 0xf96   : > { %v1998_v41 = vsel %vm1844_vm10, %v1997_v39, %v1995_v35 }
 0xf97   : > { %v1999_v43 = vpack.c.b16 %v1998_v41, %v1998_v41 }
 0xf99   : > { %2307 = vmatmul.msk.bf16.vlgmr.msra.gmra.mxu3 %vm446_vm0, %v1999_v43 }
0x101c   : > { %v2024_v38 = vpop.f32.mrf.mxu3 }
0x101d   : > { %v2025_v40 = vadd.f32 %v2442_v30, %v2024_v38 }
0x101f   : > { %v2029_v44 = vsel %vm2028_vm15, %v2025_v40, -inf }
0x1020   : > { %2030 = vmax.xlane.f32.xlu1 %v2029_v44 }
0x1024   : > { %v2026_v45 = vpop.f32.mrf.mxu3 }
0x1093   : > { %v2031_v46 = vpop.xlane.xlu1 %2030 }
0x1094   : > { %v2032_v47 = vsub.f32 %v2025_v40, %v2031_v46 }
0x1096   : > { %v2033_v5 = vmul.f32 1.442695, %v2032_v47 }
0x1098   : > { %2523 = vpow2.f32 %v2033_v5 }
0x109e   : > { %v2524_v49 = vpop.eup %2523 }
0x109f   : > { %v2035_v42 = vsel %vm2028_vm15, %v2524_v49, 0.0 }
0x10a0   : > { %2036 = vadd.xlane.f32.xlu1 %v2035_v42 }
0x1113   : > { %v2037_v50 = vpop.xlane.xlu1 %2036 }
0x1114   : > { %2525 = vlog2.f32 %v2037_v50 }
0x111a   : > { %v2526_v51 = vpop.eup %2525 }
0x111b   : > { %v2039_v53 = vmul.f32 0.6931472, %v2526_v51 }
0x111d   : > { %v2040_v6 = vsub.f32 %v2032_v47, %v2039_v53 }
0x111f   : > { %2041 = vst.msk [vmem:[%s411_s11] sm:$0x3] %vm2028_vm15, %v2040_v6 }
0x1120   : > { %2614 = shalt.err (!%p2611_p12)
}
0x1121   : > { %2340 = dma.vmem_to_hbm [thread:$0]  (%p2801_p7), %s2056_s25, 32, %s2058_s19, %s2043_s23  }
0x1122 PF: > { %s2069_s5 = sand.u32 1, %s2645_s13   ;;  %p3361_p13 = scmp.ge.s32.totalorder %s2657_s16, 2 }
0x1123   : > { %s2070_s21 = scalar_lea.sflag [#allocation4], %s2069_s5 }
0x1124   : > { %p2351_p0 = pnand %p3361_p13, %p2769_p6 }
0x1126   : > { %p2352_p3 = pneg %p2351_p0 }
0x1128   : > { %2640 = dma.done.wait (%p2352_p3), %s2070_s21, 32  }
0x1129   : > { %2642 = vsyncadd (%p2352_p3), %s2070_s21, 4294967264  ;;  %s3362_s16 = sld [smem:[#allocation12_spill]]  ;;  %s3365_s13 = smov %s2649_s14 }
0x112a   : > { %s3363_s17 = sld [smem:[#allocation11_spill]] }
0x112b   : > { %s3364_s15 = sld [smem:[#allocation13_spill]] }
0x112f   : > { %p24_p5 = scmp.ge.s32.totalorder %s3362_s16, 4  }
0x1130   : > { %s3366_s14 = smov %s3363_s17 }
0x1131   :  { %26 = sbr.rel (!%p24_p5) target bundleno = 8 (0x8), region = 117 }
0x1136   :  { %2076 = vsyncpa [#allocation3], 1 }
0x1137   :  { %2078 = vsyncpa [#allocation3 + $0x1], 1 }
0x1138   :  { %2079 = vsyncpa [#allocation6], 1 }
0x1139   :  { %2080 = vsyncpa [#allocation4], 1 }
0x113a   :  { %2082 = vsyncpa [#allocation4 + $0x1], 1 }

</bundles_post_ra>
